<compile_context>
chip_gen: v5e
topology: v5e:2x2
jax: 0.10.0
libtpu: 0.0.40
codegen_flags: <defaults>
</compile_context>

<pallas_src>
import math
import numpy as np
import jax
import jax.numpy as jnp
from jax.experimental import pallas as pl
from jax.experimental.pallas import tpu as pltpu

# Hyper-parameters matching the PyTorch script
NINP = 64        # d_model
NHEAD = 4
NHID = 256       # dim_feedforward
NLAYERS = 1      # encoder layers
HEAD_DIM = NINP // NHEAD
LN_EPS = 1e-5
NEG_INF = -1e30  # finite stand-in for float('-inf'); identical after softmax

# packed bf16 weight-slab layout (all sections start at a multiple of 128 lanes)
W1_OFF, WQKV_OFF, WO_OFF, WD_OFF, WSLAB_W = 0, 256, 512, 640, 704


# ---------------------------------------------------------------- kernel helpers
def _layer_norm(v, g, b):
    mu = jnp.mean(v, axis=-1, keepdims=True)
    c = v - mu
    var = jnp.mean(c * c, axis=-1, keepdims=True)
    return c * jax.lax.rsqrt(var + LN_EPS) * g + b


# ---------------------------------------------------------------- Pallas kernel
def _build_kernel(D, H, R_pad):
    hd = D // H
    f32 = jnp.float32
    bf16 = jnp.bfloat16

    def kernel(x_ref, mask_ref, wslab_ref, w2_ref, pslab_ref, out_ref):
        # x already has the positional encoding added (wrapper); dropout = identity (eval)
        x = x_ref[...]                                                  # (R_pad, D) f32

        # small parameters (one per slab row, static slices)
        bqkv = pslab_ref[0:1, 0:3 * D]
        b1   = pslab_ref[1:2, 0:NHID]
        bo   = pslab_ref[2:3, 0:D]
        b2   = pslab_ref[3:4, 0:D]
        bd   = pslab_ref[4:5, 0:D]
        g1   = pslab_ref[5:6, 0:D]
        be1  = pslab_ref[6:7, 0:D]
        g2   = pslab_ref[7:8, 0:D]
        be2  = pslab_ref[8:9, 0:D]
        gf   = pslab_ref[9:10, 0:D]
        bef  = pslab_ref[10:11, 0:D]

        # packed bf16 matmul weights (lane-aligned sections of one slab)
        wqkv = wslab_ref[:, WQKV_OFF:WQKV_OFF + 3 * D]                   # (D, 3D)
        wo   = wslab_ref[:, WO_OFF:WO_OFF + D]                           # (D, D)
        w1   = wslab_ref[:, W1_OFF:W1_OFF + NHID]                        # (D, NHID)
        wd   = wslab_ref[:, WD_OFF:WD_OFF + D]                           # (D, D)

        # fused Q/K/V projection: one (R, D) @ (D, 3D) MXU matmul; softmax scale is folded
        # into the Q columns of wqkv / bqkv at init time.
        qkv = jnp.dot(x.astype(bf16), wqkv, preferred_element_type=f32) + bqkv
        qkv_b = qkv.astype(bf16)                                         # single cast, (R_pad, 3D)

        mask = mask_ref[...]                                             # (R_pad, R_pad) f32

        # multi-head self-attention over the whole folded slab; out-projection accumulated per
        # head (no concat), MXU f32 accumulation everywhere.
        attn = bo                                                        # (1, D), broadcasts up
        for h in range(H):
            qh = qkv_b[:, h * hd:(h + 1) * hd]                           # (R_pad, hd) bf16
            kh = qkv_b[:, D + h * hd:D + (h + 1) * hd]
            vh = qkv_b[:, 2 * D + h * hd:2 * D + (h + 1) * hd]
            s = jax.lax.dot_general(qh, kh, (((1,), (1,)), ((), ())),
                                    preferred_element_type=f32)          # (R_pad, R_pad)
            s = s + mask
            s = s - jnp.max(s, axis=-1, keepdims=True)
            p = jnp.exp(s)
            p = p * pl.reciprocal(jnp.sum(p, axis=-1, keepdims=True), approx=True)
            head = jnp.dot(p.astype(bf16), vh, preferred_element_type=f32)   # (R_pad, hd)
            attn = attn + jnp.dot(head.astype(bf16), wo[h * hd:(h + 1) * hd, :],
                                  preferred_element_type=f32)            # (R_pad, D)

        # residual + LayerNorm 1 (f32 statistics)
        x = _layer_norm(x + attn, g1, be1)

        # feed-forward (ReLU) + residual + LayerNorm 2
        h1 = jnp.dot(x.astype(bf16), w1, preferred_element_type=f32) + b1
        h1 = jnp.maximum(h1, 0.0)
        ff = jnp.dot(h1.astype(bf16), w2_ref[...], preferred_element_type=f32) + b2
        x = _layer_norm(x + ff, g2, be2)

        # final encoder LayerNorm (nn.Transformer adds one after the encoder stack)
        x = _layer_norm(x, gf, bef)

        # decoder Linear(ninp, ninp)
        out_ref[...] = jnp.dot(x.astype(bf16), wd, preferred_element_type=f32) + bd

    return kernel


def _build_mask(R_pad, B):
    # block-diagonal (same batch) + causal additive mask for the s-major folded row axis.
    # Built with numpy at trace time -> embedded as a constant, no runtime XLA compute.
    r = np.arange(R_pad)
    pos, bid = r // B, r % B
    allowed = (bid[:, None] == bid[None, :]) & (pos[None, :] <= pos[:, None])
    return np.where(allowed, 0.0, NEG_INF).astype(np.float32)


# ---------------------------------------------------------------- wrapper
@jax.jit
def transformer_forward(src, params):
    S, B, D = src.shape
    R = S * B
    R_pad = ((R + 7) // 8) * 8                 # 50 -> 56: full-sublane vector ops / unmasked rows

    # s-major fold: (S, B, D) -> (S*B, D) is a FREE reshape (no transpose); add PE and pad here.
    x = src.reshape(R, D).astype(jnp.float32) + jnp.repeat(params["pe"][:S], B, axis=0)
    x = jnp.pad(x, ((0, R_pad - R), (0, 0)))

    mask = jnp.asarray(_build_mask(R_pad, B))

    kernel = _build_kernel(D, NHEAD, R_pad)

    # Single grid step: whole problem (~0.2 MB resident) fits trivially in VMEM on v5e/v6e/v7x;
    # no multi-core split at this size (per-step overhead would exceed the compute saved).
    out = pl.pallas_call(
        kernel,
        out_shape=jax.ShapeDtypeStruct((R_pad, D), jnp.float32),
        in_specs=[pl.BlockSpec(memory_space=pltpu.MemorySpace.VMEM)] * 5,
        out_specs=pl.BlockSpec(memory_space=pltpu.MemorySpace.VMEM),
    )(x, mask, params["wslab"], params["w2t"], params["pslab"])

    return out[:R].reshape(S, B, D)            # s-major fold makes this reshape free too


# ---------------------------------------------------------------- parameters
def make_pe(d_model, max_len=512):
    pos = jnp.arange(max_len, dtype=jnp.float32)[:, None]
    div = jnp.exp(jnp.arange(0, d_model, 2, dtype=jnp.float32)
                  * (-math.log(10000.0) / d_model))
    pe = jnp.zeros((max_len, d_model), jnp.float32)
    pe = pe.at[:, 0::2].set(jnp.sin(pos * div))
    pe = pe.at[:, 1::2].set(jnp.cos(pos * div))
    return pe


def init_params(key):
    D, F = NINP, NHID
    ks = jax.random.split(key, 10)

    def rnd(k, shape, s=0.1):
        return (s * jax.random.normal(k, shape)).astype(jnp.float32)

    # PyTorch-shaped parameters (out_features, in_features)
    in_proj_w = rnd(ks[0], (3 * D, D))
    in_proj_b = rnd(ks[1], (3 * D,))
    out_proj_w = rnd(ks[2], (D, D))
    out_proj_b = rnd(ks[3], (D,))
    lin1_w = rnd(ks[4], (F, D))
    lin1_b = rnd(ks[5], (F,))
    lin2_w = rnd(ks[6], (D, F))
    lin2_b = rnd(ks[7], (D,))
    dec_w = rnd(ks[8], (D, D))
    dec_b = rnd(ks[9], (D,))
    ones = jnp.ones((D,), jnp.float32)
    zeros = jnp.zeros((D,), jnp.float32)

    wq, wk, wv = in_proj_w[:D], in_proj_w[D:2 * D], in_proj_w[2 * D:]
    bq, bk, bv = in_proj_b[:D], in_proj_b[D:2 * D], in_proj_b[2 * D:]

    scale = 1.0 / math.sqrt(HEAD_DIM)
    # (in, out) orientation, softmax 1/sqrt(hd) folded into the Q projection
    wqkv = jnp.concatenate([wq.T * scale, wk.T, wv.T], axis=1)          # (D, 3D)
    bqkv = jnp.concatenate([bq * scale, bk, bv])                        # (3D,)

    # packed bf16 weight slab (64, 704): [w1^T | wqkv | wo^T | wdec^T], 128-lane-aligned sections
    wslab = jnp.zeros((D, WSLAB_W), jnp.float32)
    wslab = wslab.at[:, W1_OFF:W1_OFF + F].set(lin1_w.T)
    wslab = wslab.at[:, WQKV_OFF:WQKV_OFF + 3 * D].set(wqkv)
    wslab = wslab.at[:, WO_OFF:WO_OFF + D].set(out_proj_w.T)
    wslab = wslab.at[:, WD_OFF:WD_OFF + D].set(dec_w.T)
    wslab = wslab.astype(jnp.bfloat16)

    # packed f32 small-parameter slab (16, 256): one parameter per row
    pslab = jnp.zeros((16, 256), jnp.float32)
    pslab = pslab.at[0, 0:3 * D].set(bqkv)
    pslab = pslab.at[1, 0:F].set(lin1_b)
    pslab = pslab.at[2, 0:D].set(out_proj_b)
    pslab = pslab.at[3, 0:D].set(lin2_b)
    pslab = pslab.at[4, 0:D].set(dec_b)
    pslab = pslab.at[5, 0:D].set(ones)    # ln1 gamma
    pslab = pslab.at[6, 0:D].set(zeros)   # ln1 beta
    pslab = pslab.at[7, 0:D].set(ones)    # ln2 gamma
    pslab = pslab.at[8, 0:D].set(zeros)   # ln2 beta
    pslab = pslab.at[9, 0:D].set(ones)    # final-ln gamma
    pslab = pslab.at[10, 0:D].set(zeros)  # final-ln beta

    return dict(
        pe=make_pe(D),
        # kernel inputs
        wslab=wslab, w2t=lin2_w.T.astype(jnp.bfloat16), pslab=pslab,
        # PyTorch-layout f32 copies (pure-JAX reference only)
        wq=wq, bq=bq, wk=wk, bk=bk, wv=wv, bv=bv,
        wo=out_proj_w, bo=out_proj_b,
        w1=lin1_w, b1=lin1_b, w2=lin2_w, b2=lin2_b,
        wd=dec_w, bd=dec_b,
        g1=ones, be1=zeros, g2=ones, be2=zeros, gf=ones, bef=zeros,
    )


# ---------------------------------------------------------------- pure-JAX reference
def reference_forward(src, P):
    S, B, D = src.shape
    H, hd = NHEAD, D // NHEAD
    x = jnp.transpose(src, (1, 0, 2)) + P["pe"][:S][None]               # (B, S, D)
    idx = jnp.arange(S)
    mask = jnp.where(idx[None, :] > idx[:, None], NEG_INF, 0.0)

    def lin(v, w, b):
        return v @ w.T + b

    def ln(v, g, b):
        mu = v.mean(-1, keepdims=True)
        c = v - mu
        var = (c * c).mean(-1, keepdims=True)
        return c / jnp.sqrt(var + LN_EPS) * g + b

    def split(t):
        return t.reshape(B, S, H, hd).transpose(0, 2, 1, 3)

    q = split(lin(x, P["wq"], P["bq"]))
    k = split(lin(x, P["wk"], P["bk"]))
    v = split(lin(x, P["wv"], P["bv"]))
    s = jnp.einsum("bhsd,bhtd->bhst", q, k) / math.sqrt(hd) + mask
    p = jax.nn.softmax(s, axis=-1)
    o = jnp.einsum("bhst,bhtd->bhsd", p, v).transpose(0, 2, 1, 3).reshape(B, S, D)
    o = lin(o, P["wo"], P["bo"])
    x = ln(x + o, P["g1"], P["be1"])
    ff = lin(jax.nn.relu(lin(x, P["w1"], P["b1"])), P["w2"], P["b2"])
    x = ln(x + ff, P["g2"], P["be2"])
    x = ln(x, P["gf"], P["bef"])
    out = lin(x, P["wd"], P["bd"])
    return jnp.transpose(out, (1, 0, 2))


# ---------------------------------------------------------------- main
if __name__ == "__main__":
    key = jax.random.PRNGKey(0)
    k_src, k_par = jax.random.split(key)
    S, B = 10, 5                                   # matches `src = torch.rand((10, 5, ninp))`
    src = jax.random.uniform(k_src, (S, B, NINP), jnp.float32)
    params = init_params(k_par)

    out = transformer_forward(src, params)
    out = jax.block_until_ready(out)
    assert out.shape == (S, B, NINP)

    ref = reference_forward(src, params)
    if not np.allclose(np.asarray(out), np.asarray(ref), atol=5e-2, rtol=5e-2):
        raise AssertionError("Pallas output does not match JAX reference")

    print("KERNEL_OK")
</pallas_src>

<mosaic_0001>
module attributes {stable_mosaic.version = 11 : i64} {
  func.func @kernel(%arg0: memref<56x64xf32, #tpu.memory_space<vmem>>, %arg1: memref<56x56xf32, #tpu.memory_space<vmem>>, %arg2: memref<64x704xbf16, #tpu.memory_space<vmem>>, %arg3: memref<256x64xbf16, #tpu.memory_space<vmem>>, %arg4: memref<16x256xf32, #tpu.memory_space<vmem>>, %arg5: memref<56x64xf32, #tpu.memory_space<vmem>>) attributes {dimension_semantics = [], scalar_prefetch = 0 : i64, scratch_operands = 0 : i64, tpu.core_type = #tpu.core_type<tc>} {
    %c0 = arith.constant 0 : index
    %c0_0 = arith.constant 0 : index
    %0 = vector.load %arg0[%c0, %c0_0] : memref<56x64xf32, #tpu.memory_space<vmem>>, vector<56x64xf32>
    %c0_1 = arith.constant 0 : index
    %c0_2 = arith.constant 0 : index
    %1 = vector.load %arg4[%c0_1, %c0_2] : memref<16x256xf32, #tpu.memory_space<vmem>>, vector<1x192xf32>
    %c1 = arith.constant 1 : index
    %c0_3 = arith.constant 0 : index
    %2 = vector.load %arg4[%c1, %c0_3] : memref<16x256xf32, #tpu.memory_space<vmem>>, vector<1x256xf32>
    %c2 = arith.constant 2 : index
    %c0_4 = arith.constant 0 : index
    %3 = vector.load %arg4[%c2, %c0_4] : memref<16x256xf32, #tpu.memory_space<vmem>>, vector<1x64xf32>
    %c3 = arith.constant 3 : index
    %c0_5 = arith.constant 0 : index
    %4 = vector.load %arg4[%c3, %c0_5] : memref<16x256xf32, #tpu.memory_space<vmem>>, vector<1x64xf32>
    %c4 = arith.constant 4 : index
    %c0_6 = arith.constant 0 : index
    %5 = vector.load %arg4[%c4, %c0_6] : memref<16x256xf32, #tpu.memory_space<vmem>>, vector<1x64xf32>
    %c5 = arith.constant 5 : index
    %c0_7 = arith.constant 0 : index
    %6 = vector.load %arg4[%c5, %c0_7] : memref<16x256xf32, #tpu.memory_space<vmem>>, vector<1x64xf32>
    %c6 = arith.constant 6 : index
    %c0_8 = arith.constant 0 : index
    %7 = vector.load %arg4[%c6, %c0_8] : memref<16x256xf32, #tpu.memory_space<vmem>>, vector<1x64xf32>
    %c7 = arith.constant 7 : index
    %c0_9 = arith.constant 0 : index
    %8 = vector.load %arg4[%c7, %c0_9] : memref<16x256xf32, #tpu.memory_space<vmem>>, vector<1x64xf32>
    %c8 = arith.constant 8 : index
    %c0_10 = arith.constant 0 : index
    %9 = vector.load %arg4[%c8, %c0_10] : memref<16x256xf32, #tpu.memory_space<vmem>>, vector<1x64xf32>
    %c9 = arith.constant 9 : index
    %c0_11 = arith.constant 0 : index
    %10 = vector.load %arg4[%c9, %c0_11] : memref<16x256xf32, #tpu.memory_space<vmem>>, vector<1x64xf32>
    %c10 = arith.constant 10 : index
    %c0_12 = arith.constant 0 : index
    %11 = vector.load %arg4[%c10, %c0_12] : memref<16x256xf32, #tpu.memory_space<vmem>>, vector<1x64xf32>
    %c0_13 = arith.constant 0 : index
    %c256 = arith.constant 256 : index
    %12 = vector.load %arg2[%c0_13, %c256] : memref<64x704xbf16, #tpu.memory_space<vmem>>, vector<64x192xbf16>
    %c0_14 = arith.constant 0 : index
    %c512 = arith.constant 512 : index
    %13 = vector.load %arg2[%c0_14, %c512] : memref<64x704xbf16, #tpu.memory_space<vmem>>, vector<64x64xbf16>
    %c0_15 = arith.constant 0 : index
    %c0_16 = arith.constant 0 : index
    %14 = vector.load %arg2[%c0_15, %c0_16] : memref<64x704xbf16, #tpu.memory_space<vmem>>, vector<64x256xbf16>
    %c0_17 = arith.constant 0 : index
    %c640 = arith.constant 640 : index
    %15 = vector.load %arg2[%c0_17, %c640] : memref<64x704xbf16, #tpu.memory_space<vmem>>, vector<64x64xbf16>
    %16 = arith.truncf %0 : vector<56x64xf32> to vector<56x64xbf16>
    %cst = arith.constant dense<0.000000e+00> : vector<56x192xf32>
    %17 = tpu.matmul %16, %12, %cst {dimension_numbers = #tpu.dot_dimension_numbers<[1], [0], [0], [1], [0, 0, 1, 1], [], []>} : vector<56x64xbf16>, vector<64x192xbf16>, vector<56x192xf32> -> vector<56x192xf32>
    %18 = vector.broadcast %1 : vector<1x192xf32> to vector<56x192xf32>
    %19 = arith.addf %17, %18 : vector<56x192xf32>
    %20 = arith.truncf %19 : vector<56x192xf32> to vector<56x192xbf16>
    %c0_18 = arith.constant 0 : index
    %c0_19 = arith.constant 0 : index
    %21 = vector.load %arg1[%c0_18, %c0_19] : memref<56x56xf32, #tpu.memory_space<vmem>>, vector<56x56xf32>
    %22 = vector.extract_strided_slice %20 {offsets = [0, 0], sizes = [56, 16], strides = [1, 1]} : vector<56x192xbf16> to vector<56x16xbf16>
    %23 = vector.extract_strided_slice %20 {offsets = [0, 64], sizes = [56, 16], strides = [1, 1]} : vector<56x192xbf16> to vector<56x16xbf16>
    %24 = vector.extract_strided_slice %20 {offsets = [0, 128], sizes = [56, 16], strides = [1, 1]} : vector<56x192xbf16> to vector<56x16xbf16>
    %cst_20 = arith.constant dense<0.000000e+00> : vector<56x56xf32>
    %25 = tpu.matmul %22, %23, %cst_20 {dimension_numbers = #tpu.dot_dimension_numbers<[1], [1], [0], [0], [0, 0, 1, 0], [], []>} : vector<56x16xbf16>, vector<56x16xbf16>, vector<56x56xf32> -> vector<56x56xf32>
    %26 = arith.addf %25, %21 : vector<56x56xf32>
    %cst_21 = arith.constant dense<0xFF800000> : vector<56xf32>
    %27 = vector.multi_reduction <maximumf>, %26, %cst_21 [1] : vector<56x56xf32> to vector<56xf32>
    %28 = vector.shape_cast %27 : vector<56xf32> to vector<56x1xf32>
    %29 = vector.broadcast %28 : vector<56x1xf32> to vector<56x56xf32>
    %30 = arith.subf %26, %29 : vector<56x56xf32>
    %31 = math.exp %30 : vector<56x56xf32>
    %cst_22 = arith.constant dense<0.000000e+00> : vector<56xf32>
    %32 = vector.multi_reduction <add>, %31, %cst_22 [1] : vector<56x56xf32> to vector<56xf32>
    %33 = vector.shape_cast %32 : vector<56xf32> to vector<56x1xf32>
    %34 = tpu.reciprocal %33 {approx = true} : vector<56x1xf32> -> vector<56x1xf32>
    %35 = vector.broadcast %34 : vector<56x1xf32> to vector<56x56xf32>
    %36 = arith.mulf %31, %35 : vector<56x56xf32>
    %37 = arith.truncf %36 : vector<56x56xf32> to vector<56x56xbf16>
    %cst_23 = arith.constant dense<0.000000e+00> : vector<56x16xf32>
    %38 = tpu.matmul %37, %24, %cst_23 {dimension_numbers = #tpu.dot_dimension_numbers<[1], [0], [0], [1], [0, 0, 1, 1], [], []>} : vector<56x56xbf16>, vector<56x16xbf16>, vector<56x16xf32> -> vector<56x16xf32>
    %39 = arith.truncf %38 : vector<56x16xf32> to vector<56x16xbf16>
    %40 = vector.extract_strided_slice %13 {offsets = [0, 0], sizes = [16, 64], strides = [1, 1]} : vector<64x64xbf16> to vector<16x64xbf16>
    %cst_24 = arith.constant dense<0.000000e+00> : vector<56x64xf32>
    %41 = tpu.matmul %39, %40, %cst_24 {dimension_numbers = #tpu.dot_dimension_numbers<[1], [0], [0], [1], [0, 0, 1, 1], [], []>} : vector<56x16xbf16>, vector<16x64xbf16>, vector<56x64xf32> -> vector<56x64xf32>
    %42 = vector.broadcast %3 : vector<1x64xf32> to vector<56x64xf32>
    %43 = arith.addf %42, %41 : vector<56x64xf32>
    %44 = vector.extract_strided_slice %20 {offsets = [0, 16], sizes = [56, 16], strides = [1, 1]} : vector<56x192xbf16> to vector<56x16xbf16>
    %45 = vector.extract_strided_slice %20 {offsets = [0, 80], sizes = [56, 16], strides = [1, 1]} : vector<56x192xbf16> to vector<56x16xbf16>
    %46 = vector.extract_strided_slice %20 {offsets = [0, 144], sizes = [56, 16], strides = [1, 1]} : vector<56x192xbf16> to vector<56x16xbf16>
    %cst_25 = arith.constant dense<0.000000e+00> : vector<56x56xf32>
    %47 = tpu.matmul %44, %45, %cst_25 {dimension_numbers = #tpu.dot_dimension_numbers<[1], [1], [0], [0], [0, 0, 1, 0], [], []>} : vector<56x16xbf16>, vector<56x16xbf16>, vector<56x56xf32> -> vector<56x56xf32>
    %48 = arith.addf %47, %21 : vector<56x56xf32>
    %cst_26 = arith.constant dense<0xFF800000> : vector<56xf32>
    %49 = vector.multi_reduction <maximumf>, %48, %cst_26 [1] : vector<56x56xf32> to vector<56xf32>
    %50 = vector.shape_cast %49 : vector<56xf32> to vector<56x1xf32>
    %51 = vector.broadcast %50 : vector<56x1xf32> to vector<56x56xf32>
    %52 = arith.subf %48, %51 : vector<56x56xf32>
    %53 = math.exp %52 : vector<56x56xf32>
    %cst_27 = arith.constant dense<0.000000e+00> : vector<56xf32>
    %54 = vector.multi_reduction <add>, %53, %cst_27 [1] : vector<56x56xf32> to vector<56xf32>
    %55 = vector.shape_cast %54 : vector<56xf32> to vector<56x1xf32>
    %56 = tpu.reciprocal %55 {approx = true} : vector<56x1xf32> -> vector<56x1xf32>
    %57 = vector.broadcast %56 : vector<56x1xf32> to vector<56x56xf32>
    %58 = arith.mulf %53, %57 : vector<56x56xf32>
    %59 = arith.truncf %58 : vector<56x56xf32> to vector<56x56xbf16>
    %cst_28 = arith.constant dense<0.000000e+00> : vector<56x16xf32>
    %60 = tpu.matmul %59, %46, %cst_28 {dimension_numbers = #tpu.dot_dimension_numbers<[1], [0], [0], [1], [0, 0, 1, 1], [], []>} : vector<56x56xbf16>, vector<56x16xbf16>, vector<56x16xf32> -> vector<56x16xf32>
    %61 = arith.truncf %60 : vector<56x16xf32> to vector<56x16xbf16>
    %62 = vector.extract_strided_slice %13 {offsets = [16, 0], sizes = [16, 64], strides = [1, 1]} : vector<64x64xbf16> to vector<16x64xbf16>
    %cst_29 = arith.constant dense<0.000000e+00> : vector<56x64xf32>
    %63 = tpu.matmul %61, %62, %cst_29 {dimension_numbers = #tpu.dot_dimension_numbers<[1], [0], [0], [1], [0, 0, 1, 1], [], []>} : vector<56x16xbf16>, vector<16x64xbf16>, vector<56x64xf32> -> vector<56x64xf32>
    %64 = arith.addf %43, %63 : vector<56x64xf32>
    %65 = vector.extract_strided_slice %20 {offsets = [0, 32], sizes = [56, 16], strides = [1, 1]} : vector<56x192xbf16> to vector<56x16xbf16>
    %66 = vector.extract_strided_slice %20 {offsets = [0, 96], sizes = [56, 16], strides = [1, 1]} : vector<56x192xbf16> to vector<56x16xbf16>
    %67 = vector.extract_strided_slice %20 {offsets = [0, 160], sizes = [56, 16], strides = [1, 1]} : vector<56x192xbf16> to vector<56x16xbf16>
    %cst_30 = arith.constant dense<0.000000e+00> : vector<56x56xf32>
    %68 = tpu.matmul %65, %66, %cst_30 {dimension_numbers = #tpu.dot_dimension_numbers<[1], [1], [0], [0], [0, 0, 1, 0], [], []>} : vector<56x16xbf16>, vector<56x16xbf16>, vector<56x56xf32> -> vector<56x56xf32>
    %69 = arith.addf %68, %21 : vector<56x56xf32>
    %cst_31 = arith.constant dense<0xFF800000> : vector<56xf32>
    %70 = vector.multi_reduction <maximumf>, %69, %cst_31 [1] : vector<56x56xf32> to vector<56xf32>
    %71 = vector.shape_cast %70 : vector<56xf32> to vector<56x1xf32>
    %72 = vector.broadcast %71 : vector<56x1xf32> to vector<56x56xf32>
    %73 = arith.subf %69, %72 : vector<56x56xf32>
    %74 = math.exp %73 : vector<56x56xf32>
    %cst_32 = arith.constant dense<0.000000e+00> : vector<56xf32>
    %75 = vector.multi_reduction <add>, %74, %cst_32 [1] : vector<56x56xf32> to vector<56xf32>
    %76 = vector.shape_cast %75 : vector<56xf32> to vector<56x1xf32>
    %77 = tpu.reciprocal %76 {approx = true} : vector<56x1xf32> -> vector<56x1xf32>
    %78 = vector.broadcast %77 : vector<56x1xf32> to vector<56x56xf32>
    %79 = arith.mulf %74, %78 : vector<56x56xf32>
    %80 = arith.truncf %79 : vector<56x56xf32> to vector<56x56xbf16>
    %cst_33 = arith.constant dense<0.000000e+00> : vector<56x16xf32>
    %81 = tpu.matmul %80, %67, %cst_33 {dimension_numbers = #tpu.dot_dimension_numbers<[1], [0], [0], [1], [0, 0, 1, 1], [], []>} : vector<56x56xbf16>, vector<56x16xbf16>, vector<56x16xf32> -> vector<56x16xf32>
    %82 = arith.truncf %81 : vector<56x16xf32> to vector<56x16xbf16>
    %83 = vector.extract_strided_slice %13 {offsets = [32, 0], sizes = [16, 64], strides = [1, 1]} : vector<64x64xbf16> to vector<16x64xbf16>
    %cst_34 = arith.constant dense<0.000000e+00> : vector<56x64xf32>
    %84 = tpu.matmul %82, %83, %cst_34 {dimension_numbers = #tpu.dot_dimension_numbers<[1], [0], [0], [1], [0, 0, 1, 1], [], []>} : vector<56x16xbf16>, vector<16x64xbf16>, vector<56x64xf32> -> vector<56x64xf32>
    %85 = arith.addf %64, %84 : vector<56x64xf32>
    %86 = vector.extract_strided_slice %20 {offsets = [0, 48], sizes = [56, 16], strides = [1, 1]} : vector<56x192xbf16> to vector<56x16xbf16>
    %87 = vector.extract_strided_slice %20 {offsets = [0, 112], sizes = [56, 16], strides = [1, 1]} : vector<56x192xbf16> to vector<56x16xbf16>
    %88 = vector.extract_strided_slice %20 {offsets = [0, 176], sizes = [56, 16], strides = [1, 1]} : vector<56x192xbf16> to vector<56x16xbf16>
    %cst_35 = arith.constant dense<0.000000e+00> : vector<56x56xf32>
    %89 = tpu.matmul %86, %87, %cst_35 {dimension_numbers = #tpu.dot_dimension_numbers<[1], [1], [0], [0], [0, 0, 1, 0], [], []>} : vector<56x16xbf16>, vector<56x16xbf16>, vector<56x56xf32> -> vector<56x56xf32>
    %90 = arith.addf %89, %21 : vector<56x56xf32>
    %cst_36 = arith.constant dense<0xFF800000> : vector<56xf32>
    %91 = vector.multi_reduction <maximumf>, %90, %cst_36 [1] : vector<56x56xf32> to vector<56xf32>
    %92 = vector.shape_cast %91 : vector<56xf32> to vector<56x1xf32>
    %93 = vector.broadcast %92 : vector<56x1xf32> to vector<56x56xf32>
    %94 = arith.subf %90, %93 : vector<56x56xf32>
    %95 = math.exp %94 : vector<56x56xf32>
    %cst_37 = arith.constant dense<0.000000e+00> : vector<56xf32>
    %96 = vector.multi_reduction <add>, %95, %cst_37 [1] : vector<56x56xf32> to vector<56xf32>
    %97 = vector.shape_cast %96 : vector<56xf32> to vector<56x1xf32>
    %98 = tpu.reciprocal %97 {approx = true} : vector<56x1xf32> -> vector<56x1xf32>
    %99 = vector.broadcast %98 : vector<56x1xf32> to vector<56x56xf32>
    %100 = arith.mulf %95, %99 : vector<56x56xf32>
    %101 = arith.truncf %100 : vector<56x56xf32> to vector<56x56xbf16>
    %cst_38 = arith.constant dense<0.000000e+00> : vector<56x16xf32>
    %102 = tpu.matmul %101, %88, %cst_38 {dimension_numbers = #tpu.dot_dimension_numbers<[1], [0], [0], [1], [0, 0, 1, 1], [], []>} : vector<56x56xbf16>, vector<56x16xbf16>, vector<56x16xf32> -> vector<56x16xf32>
    %103 = arith.truncf %102 : vector<56x16xf32> to vector<56x16xbf16>
    %104 = vector.extract_strided_slice %13 {offsets = [48, 0], sizes = [16, 64], strides = [1, 1]} : vector<64x64xbf16> to vector<16x64xbf16>
    %cst_39 = arith.constant dense<0.000000e+00> : vector<56x64xf32>
    %105 = tpu.matmul %103, %104, %cst_39 {dimension_numbers = #tpu.dot_dimension_numbers<[1], [0], [0], [1], [0, 0, 1, 1], [], []>} : vector<56x16xbf16>, vector<16x64xbf16>, vector<56x64xf32> -> vector<56x64xf32>
    %106 = arith.addf %85, %105 : vector<56x64xf32>
    %107 = arith.addf %0, %106 : vector<56x64xf32>
    %cst_40 = arith.constant dense<0.000000e+00> : vector<56xf32>
    %108 = vector.multi_reduction <add>, %107, %cst_40 [1] : vector<56x64xf32> to vector<56xf32>
    %109 = vector.shape_cast %108 : vector<56xf32> to vector<56x1xf32>
    %cst_41 = arith.constant 6.400000e+01 : f32
    %110 = vector.broadcast %cst_41 : f32 to vector<56x1xf32>
    %111 = arith.divf %109, %110 : vector<56x1xf32>
    %112 = vector.broadcast %111 : vector<56x1xf32> to vector<56x64xf32>
    %113 = arith.subf %107, %112 : vector<56x64xf32>
    %114 = arith.mulf %113, %113 : vector<56x64xf32>
    %cst_42 = arith.constant dense<0.000000e+00> : vector<56xf32>
    %115 = vector.multi_reduction <add>, %114, %cst_42 [1] : vector<56x64xf32> to vector<56xf32>
    %116 = vector.shape_cast %115 : vector<56xf32> to vector<56x1xf32>
    %cst_43 = arith.constant 6.400000e+01 : f32
    %117 = vector.broadcast %cst_43 : f32 to vector<56x1xf32>
    %118 = arith.divf %116, %117 : vector<56x1xf32>
    %cst_44 = arith.constant 9.99999974E-6 : f32
    %119 = vector.broadcast %cst_44 : f32 to vector<56x1xf32>
    %120 = arith.addf %118, %119 : vector<56x1xf32>
    %121 = math.rsqrt %120 : vector<56x1xf32>
    %122 = vector.broadcast %121 : vector<56x1xf32> to vector<56x64xf32>
    %123 = arith.mulf %113, %122 : vector<56x64xf32>
    %124 = vector.broadcast %6 : vector<1x64xf32> to vector<56x64xf32>
    %125 = arith.mulf %123, %124 : vector<56x64xf32>
    %126 = vector.broadcast %7 : vector<1x64xf32> to vector<56x64xf32>
    %127 = arith.addf %125, %126 : vector<56x64xf32>
    %128 = arith.truncf %127 : vector<56x64xf32> to vector<56x64xbf16>
    %cst_45 = arith.constant dense<0.000000e+00> : vector<56x256xf32>
    %129 = tpu.matmul %128, %14, %cst_45 {dimension_numbers = #tpu.dot_dimension_numbers<[1], [0], [0], [1], [0, 0, 1, 1], [], []>} : vector<56x64xbf16>, vector<64x256xbf16>, vector<56x256xf32> -> vector<56x256xf32>
    %130 = vector.broadcast %2 : vector<1x256xf32> to vector<56x256xf32>
    %131 = arith.addf %129, %130 : vector<56x256xf32>
    %cst_46 = arith.constant 0.000000e+00 : f32
    %132 = vector.broadcast %cst_46 : f32 to vector<56x256xf32>
    %133 = arith.maximumf %131, %132 : vector<56x256xf32>
    %134 = arith.truncf %133 : vector<56x256xf32> to vector<56x256xbf16>
    %c0_47 = arith.constant 0 : index
    %c0_48 = arith.constant 0 : index
    %135 = vector.load %arg3[%c0_47, %c0_48] : memref<256x64xbf16, #tpu.memory_space<vmem>>, vector<256x64xbf16>
    %cst_49 = arith.constant dense<0.000000e+00> : vector<56x64xf32>
    %136 = tpu.matmul %134, %135, %cst_49 {dimension_numbers = #tpu.dot_dimension_numbers<[1], [0], [0], [1], [0, 0, 1, 1], [], []>} : vector<56x256xbf16>, vector<256x64xbf16>, vector<56x64xf32> -> vector<56x64xf32>
    %137 = vector.broadcast %4 : vector<1x64xf32> to vector<56x64xf32>
    %138 = arith.addf %136, %137 : vector<56x64xf32>
    %139 = arith.addf %127, %138 : vector<56x64xf32>
    %cst_50 = arith.constant dense<0.000000e+00> : vector<56xf32>
    %140 = vector.multi_reduction <add>, %139, %cst_50 [1] : vector<56x64xf32> to vector<56xf32>
    %141 = vector.shape_cast %140 : vector<56xf32> to vector<56x1xf32>
    %cst_51 = arith.constant 6.400000e+01 : f32
    %142 = vector.broadcast %cst_51 : f32 to vector<56x1xf32>
    %143 = arith.divf %141, %142 : vector<56x1xf32>
    %144 = vector.broadcast %143 : vector<56x1xf32> to vector<56x64xf32>
    %145 = arith.subf %139, %144 : vector<56x64xf32>
    %146 = arith.mulf %145, %145 : vector<56x64xf32>
    %cst_52 = arith.constant dense<0.000000e+00> : vector<56xf32>
    %147 = vector.multi_reduction <add>, %146, %cst_52 [1] : vector<56x64xf32> to vector<56xf32>
    %148 = vector.shape_cast %147 : vector<56xf32> to vector<56x1xf32>
    %cst_53 = arith.constant 6.400000e+01 : f32
    %149 = vector.broadcast %cst_53 : f32 to vector<56x1xf32>
    %150 = arith.divf %148, %149 : vector<56x1xf32>
    %cst_54 = arith.constant 9.99999974E-6 : f32
    %151 = vector.broadcast %cst_54 : f32 to vector<56x1xf32>
    %152 = arith.addf %150, %151 : vector<56x1xf32>
    %153 = math.rsqrt %152 : vector<56x1xf32>
    %154 = vector.broadcast %153 : vector<56x1xf32> to vector<56x64xf32>
    %155 = arith.mulf %145, %154 : vector<56x64xf32>
    %156 = vector.broadcast %8 : vector<1x64xf32> to vector<56x64xf32>
    %157 = arith.mulf %155, %156 : vector<56x64xf32>
    %158 = vector.broadcast %9 : vector<1x64xf32> to vector<56x64xf32>
    %159 = arith.addf %157, %158 : vector<56x64xf32>
    %cst_55 = arith.constant dense<0.000000e+00> : vector<56xf32>
    %160 = vector.multi_reduction <add>, %159, %cst_55 [1] : vector<56x64xf32> to vector<56xf32>
    %161 = vector.shape_cast %160 : vector<56xf32> to vector<56x1xf32>
    %cst_56 = arith.constant 6.400000e+01 : f32
    %162 = vector.broadcast %cst_56 : f32 to vector<56x1xf32>
    %163 = arith.divf %161, %162 : vector<56x1xf32>
    %164 = vector.broadcast %163 : vector<56x1xf32> to vector<56x64xf32>
    %165 = arith.subf %159, %164 : vector<56x64xf32>
    %166 = arith.mulf %165, %165 : vector<56x64xf32>
    %cst_57 = arith.constant dense<0.000000e+00> : vector<56xf32>
    %167 = vector.multi_reduction <add>, %166, %cst_57 [1] : vector<56x64xf32> to vector<56xf32>
    %168 = vector.shape_cast %167 : vector<56xf32> to vector<56x1xf32>
    %cst_58 = arith.constant 6.400000e+01 : f32
    %169 = vector.broadcast %cst_58 : f32 to vector<56x1xf32>
    %170 = arith.divf %168, %169 : vector<56x1xf32>
    %cst_59 = arith.constant 9.99999974E-6 : f32
    %171 = vector.broadcast %cst_59 : f32 to vector<56x1xf32>
    %172 = arith.addf %170, %171 : vector<56x1xf32>
    %173 = math.rsqrt %172 : vector<56x1xf32>
    %174 = vector.broadcast %173 : vector<56x1xf32> to vector<56x64xf32>
    %175 = arith.mulf %165, %174 : vector<56x64xf32>
    %176 = vector.broadcast %10 : vector<1x64xf32> to vector<56x64xf32>
    %177 = arith.mulf %175, %176 : vector<56x64xf32>
    %178 = vector.broadcast %11 : vector<1x64xf32> to vector<56x64xf32>
    %179 = arith.addf %177, %178 : vector<56x64xf32>
    %180 = arith.truncf %179 : vector<56x64xf32> to vector<56x64xbf16>
    %cst_60 = arith.constant dense<0.000000e+00> : vector<56x64xf32>
    %181 = tpu.matmul %180, %15, %cst_60 {dimension_numbers = #tpu.dot_dimension_numbers<[1], [0], [0], [1], [0, 0, 1, 1], [], []>} : vector<56x64xbf16>, vector<64x64xbf16>, vector<56x64xf32> -> vector<56x64xf32>
    %182 = vector.broadcast %5 : vector<1x64xf32> to vector<56x64xf32>
    %183 = arith.addf %181, %182 : vector<56x64xf32>
    %c0_61 = arith.constant 0 : index
    %c0_62 = arith.constant 0 : index
    %184 = vector.load %arg5[%c0_61, %c0_62] : memref<56x64xf32, #tpu.memory_space<vmem>>, vector<56x64xf32>
    tpu.vector_store %arg5[%c0_61, %c0_62], %183 {strides = array<i32>} : memref<56x64xf32, #tpu.memory_space<vmem>>, vector<56x64xf32>,
    return
  }
}

</mosaic_0001>

<bundles_post_ra>
// kernel: transformer_forward.1
= control target key start
LH: loop header
LB: loop body
LE: loop exit
PB: predicated region body
PF: predicated region fallthrough
CT: control target
= control target key end

     0   :  { %vm121_vm0 = vcmask 523264   ;;  %vm391_vm1 = vcmask 1043456   ;;  %s2639_s16 = smov 48   ;;  %s2640_s17 = smov 64   ;;  %vm230_vm2 = vcmask 130048   ;;  %vm283_vm3 = vcmask 457728   ;;  %s3831_s2 = inlined_call_operand.vmem [shape: bf16[64,704], index: 2, kind: input, shape index: {}]   ;;  %s3832_s0 = inlined_call_operand.vmem [shape: f32[56,64], index: 0, kind: input, shape index: {}]   ;;  %s3833_s4 = inlined_call_operand.vmem [shape: f32[16,256], index: 4, kind: input, shape index: {}]   ;;  %s3834_s1 = inlined_call_operand.vmem [shape: f32[56,56], index: 1, kind: input, shape index: {}]   ;;  %s3835_s3 = inlined_call_operand.vmem [shape: bf16[256,64], index: 3, kind: input, shape index: {}]   ;;  %s3836_s5 = inlined_call_operand.vmem [shape: f32[56,64], index: 5, kind: output, shape index: {}]  }
   0x1   :  { %v2214_v0 = vld [vmem:[%s3831_s2 + $0x98] sm:$0xf]  ;;  %v2423_v1 = vld [vmem:[%s3831_s2 + $0xac] sm:$0xf0]  ;;  %v2206_v2 = vld [vmem:[%s3831_s2 + $0x68] sm:$0xf] }
   0x2   :  { %v2215_v3 = vor.u32 %v2423_v1, %v2214_v0  ;;  %v2421_v4 = vld [vmem:[%s3831_s2 + $0x7c] sm:$0xf0]  ;;  %v2422_v5 = vld [vmem:[%s3831_s2 + $0x9c] sm:$0xf]  ;;  %v2216_v7 = vld [vmem:[%s3831_s2 + $0xb0] sm:$0xf0] }
   0x3   :  { %v2207_v6 = vor.u32 %v2421_v4, %v2206_v2  ;;  %v2198_v8 = vld [vmem:[%s3831_s2 + $0x38] sm:$0xf]  ;;  %v2419_v9 = vld [vmem:[%s3831_s2 + $0x4c] sm:$0xf0]  ;;  %v2219_v10 = vor.u32 %v2422_v5, %v2216_v7  ;;  %v2420_v11 = vld [vmem:[%s3831_s2 + $0x6c] sm:$0xf] }
   0x4   :  { %138 = vmatpush.bf16.msra.mxu0 %v2215_v3  ;;  %2456 = vmatpush.bf16.msra.mxu2 %v2215_v3  ;;  %v2208_v12 = vld [vmem:[%s3831_s2 + $0x80] sm:$0xf0]  ;;  %v2199_v14 = vor.u32 %v2419_v9, %v2198_v8  ;;  %v2418_v15 = vld [vmem:[%s3831_s2 + $0x3c] sm:$0xf]  ;;  %v2200_v16 = vld [vmem:[%s3831_s2 + $0x50] sm:$0xf0] }
   0x5   :  { %2460 = vmatpush.bf16.msra.mxu1 %v2219_v10  ;;  %v2211_v13 = vor.u32 %v2420_v11, %v2208_v12  ;;  %v2190_v17 = vld [vmem:[%s3831_s2 + $0x8] sm:$0xf]  ;;  %v2417_v18 = vld [vmem:[%s3831_s2 + $0x1c] sm:$0xf0]  ;;  %v2203_v20 = vor.u32 %v2418_v15, %v2200_v16  ;;  %v23_v23 = vld [vmem:[%s3832_s0 + $0x10] sm:$0xff]  ;;  %s2641_s18 = smov 112  }
   0x6   :  { %v21_v19 = vld [vmem:[%s3832_s0] sm:$0xff]  ;;  %v2191_v21 = vor.u32 %v2417_v18, %v2190_v17  ;;  %v22_v22 = vld [vmem:[%s3832_s0 + $0x8] sm:$0xff]  ;;  %v24_v24 = vld [vmem:[%s3832_s0 + $0x18] sm:$0xff]  ;;  %s2643_s8 = smov 16   ;;  %s2644_s9 = smov 96  }
   0x7   :  { %v2416_v25 = vld [vmem:[%s3831_s2 + $0xc] sm:$0xf]  ;;  %v2192_v26 = vld [vmem:[%s3831_s2 + $0x20] sm:$0xf0]  ;;  %v72_v27 = vpack.c.bf16 %v22_v22, %v21_v19  ;;  %v73_v28 = vpack.c.bf16 %v24_v24, %v23_v23  ;;  %v27_v33 = vld [vmem:[%s3832_s0 + $0x30] sm:$0xff]  ;;  %s2645_s10 = smov 80  }
   0x8   :  { %139 = vmatpush.bf16.msra.mxu0 %v2207_v6  ;;  %2457 = vmatpush.bf16.msra.mxu2 %v2207_v6  ;;  %v2195_v29 = vor.u32 %v2416_v25, %v2192_v26  ;;  %v25_v30 = vld [vmem:[%s3832_s0 + $0x20] sm:$0xff]  ;;  %v26_v31 = vld [vmem:[%s3832_s0 + $0x28] sm:$0xff]  ;;  %v75_v34 = vpack.c.bf16 %v27_v33, %v27_v33 }
   0x9   :  { %2461 = vmatpush.bf16.msra.mxu1 %v2211_v13  ;;  %v74_v32 = vpack.c.bf16 %v26_v31, %v25_v30  ;;  %v28_v47 = vld [vmem:[%s3833_s4] ss:$8 sm:$0x3] }
   0xa   :  { %v77_v49 = vperm.slane %v28_v47, 0  ;;  %v78_v50 = vperm.slane %v28_v47, 1 }
   0xc   :  { %140 = vmatpush.bf16.msra.mxu0 %v2199_v14  ;;  %2458 = vmatpush.bf16.msra.mxu2 %v2199_v14 }
   0xd   :  { %2462 = vmatpush.bf16.msra.mxu1 %v2203_v20 }
  0x10   :  { %141 = vmatpush.bf16.msra.mxu0 %v2191_v21  ;;  %2459 = vmatpush.bf16.msra.mxu2 %v2191_v21 }
  0x11   :  { %2463 = vmatpush.bf16.msra.mxu1 %v2195_v29 }
  0x13   :  { %2220 = vmatmul.msk.bf16.vlgmr.msra.gmra.mxu0 %vm121_vm0, %v72_v27  ;;  %2221 = vmatmul.msk.bf16.vlgmr.msra.gmra.mxu2 %vm121_vm0, %v73_v28 }
  0x14   :  { %166 = vmatpush.bf16.msrb.mxu0 %v2219_v10  ;;  %2226 = vmatmul.msk.bf16.vlgmr.msra.gmra.mxu1 %vm121_vm0, %v74_v32 }
  0x18   :  { %167 = vmatpush.bf16.msrb.mxu0 %v2211_v13 }
  0x1c   :  { %168 = vmatpush.bf16.msrb.mxu0 %v2203_v20 }
  0x20   :  { %169 = vmatpush.bf16.msrb.mxu0 %v2195_v29 }
  0x23   :  { %2222 = vmatmul.msk.bf16.gmra.mxu2 %vm121_vm0, %v74_v32  ;;  %2224 = vmatmul.msk.bf16.vlgmr.msrb.gmra.mxu0 %vm121_vm0, %v72_v27 }
  0x24   :  { %2227 = vmatmul.msk.bf16.gmra.mxu1 %vm121_vm0, %v75_v34 }
  0x33   :  { %2223 = vmatmul.msk.bf16.gmra.mxu2 %vm121_vm0, %v75_v34  ;;  %2225 = vmatmul.msk.bf16.gmra.mxu0 %vm121_vm0, %v73_v28 }
  0x90   :  { %v143_v35 = vpop.f32.mrf.mxu0 }
  0x91   :  { %v181_v36 = vpop.f32.mrf.mxu1  ;;  %v144_v15 = vadd.f32 %v143_v35, %v77_v49 }
  0x92   :  { %v182_v57 = vadd.f32 %v181_v36, %v78_v50 }
  0x96   :  { %v148_v37 = vpop.f32.mrf.mxu2 }
  0x97   :  { %v149_v55 = vadd.f32 %v148_v37, %v77_v49 }
  0x98   :  { %v145_v38 = vpop.f32.mrf.mxu0 }
  0x99   :  { %v183_v39 = vpop.f32.mrf.mxu1  ;;  %v146_v6 = vadd.f32 %v145_v38, %v77_v49 }
  0x9a   :  { %v184_v59 = vadd.f32 %v183_v39, %v78_v50 }
  0x9e   :  { %v150_v40 = vpop.f32.mrf.mxu2 }
  0x9f   :  { %v151_v61 = vadd.f32 %v150_v40, %v77_v49 }
  0xa0   :  { %v171_v41 = vpop.f32.mrf.mxu0 }
  0xa1   :  { %v186_v42 = vpop.f32.mrf.mxu1  ;;  %v172_v7 = vadd.f32 %v171_v41, %v78_v50 }
  0xa2   :  { %v187_v51 = vadd.f32 %v186_v42, %v78_v50 }
  0xa3   :  { %v190_v20 = vpack.c.bf16 %v172_v7, %v144_v15 }
  0xa5   :  { %v211_v27 = vunpack.c.l.b16 %v190_v20  ;;  %v365_v32 = vunpack.c.h.b16 %v190_v20 }
  0xa6   :  { %v153_v43 = vpop.f32.mrf.mxu2 }
  0xa7   :  { %v154_v58 = vadd.f32 %v153_v43, %v77_v49 }
  0xa8   :  { %v173_v44 = vpop.f32.mrf.mxu0 }
  0xa9   :  { %v188_v45 = vpop.f32.mrf.mxu1  ;;  %v174_v2 = vadd.f32 %v173_v44, %v78_v50  ;;  %v194_v8 = vpack.c.bf16 %v182_v57, %v154_v58 }
  0xab   :  { %v191_v16 = vpack.c.bf16 %v174_v2, %v146_v6  ;;  %v369_v19 = vunpack.c.h.b16 %v194_v8  ;;  %v215_v24 = vunpack.c.l.b16 %v194_v8 }
  0xad   :  { %v212_v25 = vunpack.c.l.b16 %v191_v16  ;;  %v366_v29 = vunpack.c.h.b16 %v191_v16 }
  0xae   :  { %v155_v46 = vpop.f32.mrf.mxu2 }
  0xaf   :  { %v156_v53 = vadd.f32 %v155_v46, %v77_v49  ;;  %v2776_v31 = vpack.c.b16 %v212_v25, %v211_v27  ;;  %v2783_v33 = vpack.c.b16 %v366_v29, %v365_v32 }
  0xb0   :  { %v176_v48 = vpop.f32.mrf.mxu0 }
  0xb1   :  { %v177_v52 = vadd.f32 %v176_v48, %v78_v50  ;;  %v195_v1 = vpack.c.bf16 %v184_v59, %v156_v53 }
  0xb3   :  { %v192_v62 = vpack.c.bf16 %v177_v52, %v149_v55  ;;  %v370_v13 = vunpack.c.h.b16 %v195_v1  ;;  %v216_v21 = vunpack.c.l.b16 %v195_v1  ;;  %v2821_v55 = vld [vmem:[%s3834_s1] sm:$0xff] }
  0xb5   :  { %v213_v9 = vunpack.c.l.b16 %v192_v62  ;;  %v2769_v23 = vpack.c.b16 %v370_v13, %v369_v19  ;;  %v367_v26 = vunpack.c.h.b16 %v192_v62  ;;  %v2772_v28 = vpack.c.b16 %v216_v21, %v215_v24  ;;  %v2866_v19 = vld [vmem:[%s3834_s1 + $0x20] sm:$0xff] }
  0xb6   :  { %v158_v54 = vpop.f32.mrf.mxu2 }
  0xb7   :  { %v159_v56 = vadd.f32 %v158_v54, %v77_v49 }
  0xb8   :  { %v178_v60 = vpop.f32.mrf.mxu0 }
  0xb9   :  { %v196_v63 = vpack.c.bf16 %v187_v51, %v159_v56  ;;  %v179_v0 = vadd.f32 %v178_v60, %v78_v50  ;;  %v2831_v60 = vld [vmem:[%s3834_s1 + $0x8] sm:$0xff] }
  0xbb   :  { %v217_v3 = vunpack.c.l.b16 %v196_v63  ;;  %v371_v4 = vunpack.c.h.b16 %v196_v63  ;;  %v193_v5 = vpack.c.bf16 %v179_v0, %v151_v61 }
  0xbd   :  { %v2757_v10 = vpack.c.b16 %v217_v3, %v217_v3  ;;  %v2759_v11 = vpack.c.b16 %v371_v4, %v371_v4  ;;  %v214_v12 = vunpack.c.l.b16 %v193_v5  ;;  %v368_v22 = vunpack.c.h.b16 %v193_v5  ;;  %v2843_v3 = vld [vmem:[%s3834_s1 + $0x10] sm:$0xff] }
  0xbe   :  { %v160_v14 = vpop.f32.mrf.mxu2 }
  0xbf   :  { %v2761_v17 = vpack.c.b16 %v214_v12, %v213_v9  ;;  %494 = vrot.lane.b32.xlu2 %v2757_v10, %s2639_s16  ;;  %228 = vrot.lane.b32.xlu0 %v2757_v10, %s2640_s17  ;;  %v393_v18 = vsel %vm391_vm1, %v2759_v11, 0  ;;  %v2774_v30 = vpack.c.b16 %v368_v22, %v367_v26  ;;  %v2858_v12 = vld [vmem:[%s3834_s1 + $0x18] sm:$0xff]  ;;  %v2874_v26 = vld [vmem:[%s3834_s1 + $0x28] sm:$0xff] }
  0xc0   :  { %399 = vmatpush.bf16.msra.mxu3 %v393_v18 }
  0xc1   :  { %224 = vrot.lane.b32.xlu1 %v2761_v17, %s2640_s17 }
  0xc4   :  { %400 = vmatpush.bf16.msra.mxu3 %v2769_v23 }
  0xc7   :  { %492 = vrot.lane.b32.xlu2 %v2772_v28, %s2639_s16  ;;  %226 = vrot.lane.b32.xlu0 %v2772_v28, %s2640_s17 }
  0xc8   :  { %401 = vmatpush.bf16.msra.mxu3 %v2774_v30 }
  0xc9   :  { %222 = vrot.lane.b32.xlu1 %v2776_v31, %s2640_s17 }
  0xcc   :  { %402 = vmatpush.bf16.msra.mxu3 %v2783_v33 }
  0xcf   :  { %490 = vrot.lane.b32.xlu0 %v2761_v17, %s2639_s16  ;;  %480 = vrot.lane.b32.xlu2 %v2776_v31, %s2641_s18 }
  0xd1   :  { %488 = vrot.lane.b32.xlu1 %v2776_v31, %s2639_s16 }
  0xd7   :  { %482 = vrot.lane.b32.xlu0 %v2761_v17, %s2641_s18  ;;  %486 = vrot.lane.b32.xlu2 %v2757_v10, %s2641_s18 }
  0xd9   :  { %484 = vrot.lane.b32.xlu1 %v2772_v28, %s2641_s18 }
 0x119   :  { %v495_v34 = vpop.permute.xlu2 %494 }
 0x11a   :  { %v518_v35 = vsel %vm230_vm2, %v495_v34, 0 }
 0x11b   :  { %524 = vmatpush.bf16.xpose.msrb.mxu1 %v518_v35 }
 0x121   :  { %v493_v36 = vpop.permute.xlu2 %492 }
 0x122   :  { %v515_v37 = vsel %vm230_vm2, %v493_v36, 0 }
 0x123   :  { %525 = vmatpush.bf16.xpose.msrb.mxu1 %v515_v37 }
 0x129   :  { %v481_v50 = vpop.permute.xlu2 %480 }
 0x131   :  { %v229_v38 = vpop.permute.xlu0 %228  ;;  %v487_v53 = vpop.permute.xlu2 %486 }
 0x132   :  { %v253_v39 = vsel %vm230_vm2, %v229_v38, 0 }
 0x133   :  { %259 = vmatpush.bf16.xpose.msrb.mxu2 %v253_v39  ;;  %v225_v40 = vpop.permute.xlu1 %224 }
 0x134   :  { %v247_v45 = vsel %vm230_vm2, %v225_v40, 0 }
 0x139   :  { %v227_v41 = vpop.permute.xlu0 %226 }
 0x13a   :  { %v250_v42 = vsel %vm230_vm2, %v227_v41, 0  ;;  %v2896_v41 = vld [vmem:[%s3834_s1 + $0x30] sm:$0xff]  ;;  %s2642_s1 = smov 32  }
 0x13b   :  { %260 = vmatpush.bf16.xpose.msrb.mxu2 %v250_v42  ;;  %v223_v43 = vpop.permute.xlu1 %222 }
 0x13c   :  { %v244_v48 = vsel %vm230_vm2, %v223_v43, 0 }
 0x141   :  { %v491_v44 = vpop.permute.xlu0 %490 }
 0x142   :  { %v512_v46 = vsel %vm230_vm2, %v491_v44, 0 }
 0x143   :  { %261 = vmatpush.bf16.xpose.msrb.mxu2 %v247_v45  ;;  %526 = vmatpush.bf16.xpose.msrb.mxu1 %v512_v46  ;;  %v489_v47 = vpop.permute.xlu1 %488 }
 0x144   :  { %v509_v49 = vsel %vm230_vm2, %v489_v47, 0 }
 0x149   :  { %v483_v51 = vpop.permute.xlu0 %482 }
 0x14b   :  { %262 = vmatpush.bf16.xpose.msrb.mxu2 %v244_v48  ;;  %527 = vmatpush.bf16.xpose.msrb.mxu1 %v509_v49  ;;  %v485_v52 = vpop.permute.xlu1 %484 }
 0x152   :  { %2228 = vmatmul.msk.bf16.vlgmr.msrb.gmra.mxu2 %vm230_vm2, %v2776_v31  ;;  %2244 = vmatmul.msk.bf16.vlgmr.msrb.gmra.mxu1 %vm230_vm2, %v481_v50 }
 0x162   :  { %2229 = vmatmul.msk.bf16.gmra.mxu2 %vm230_vm2, %v2761_v17  ;;  %2245 = vmatmul.msk.bf16.gmra.mxu1 %vm230_vm2, %v483_v51 }
 0x172   :  { %2230 = vmatmul.msk.bf16.gmra.mxu2 %vm230_vm2, %v2772_v28  ;;  %2246 = vmatmul.msk.bf16.gmra.mxu1 %vm230_vm2, %v485_v52 }
 0x182   :  { %2231 = vmatmul.msk.bf16.gmra.mxu2 %vm230_vm2, %v2757_v10  ;;  %2247 = vmatmul.msk.bf16.gmra.mxu1 %vm230_vm2, %v487_v53 }
 0x1cf   :  { %v529_v54 = vpop.f32.mrf.mxu1 }
 0x1d0   :  { %v530_v18 = vadd.f32 %v529_v54, %v2821_v55 }
 0x1d2   :  { %v548_v25 = vsel %vm283_vm3, %v530_v18, -inf }
 0x1d5   :  { %v264_v56 = vpop.f32.mrf.mxu2 }
 0x1d6   :  { %v2824_v57 = vadd.f32 %v264_v56, %v2821_v55 }
 0x1d7   :  { %v531_v58 = vpop.f32.mrf.mxu1 }
 0x1d8   :  { %v284_v59 = vsel %vm283_vm3, %v2824_v57, -inf  ;;  %v2834_v61 = vadd.f32 %v531_v58, %v2831_v60 }
 0x1d9   :  { %285 = vmax.xlane.f32.xlu0 %v284_v59 }
 0x1da   :  { %v551_v2 = vsel %vm283_vm3, %v2834_v61, -inf }
 0x1dd   :  { %v266_v62 = vpop.f32.mrf.mxu2 }
 0x1de   :  { %v267_v63 = vadd.f32 %v266_v62, %v2831_v60 }
 0x1df   :  { %v534_v0 = vpop.f32.mrf.mxu1 }
 0x1e0   :  { %v287_v1 = vsel %vm283_vm3, %v267_v63, -inf  ;;  %v2846_v4 = vadd.f32 %v534_v0, %v2843_v3 }
 0x1e1   :  { %288 = vmax.xlane.f32.xlu1 %v287_v1  ;;  %552 = vmax.xlane.f32.xlu0 %v551_v2 }
 0x1e2   :  { %v554_v9 = vsel %vm283_vm3, %v2846_v4, -inf }
 0x1e5   :  { %v269_v5 = vpop.f32.mrf.mxu2 }
 0x1e6   :  { %v2849_v6 = vadd.f32 %v269_v5, %v2843_v3 }
 0x1e7   :  { %v536_v7 = vpop.f32.mrf.mxu1 }
 0x1e8   :  { %v290_v8 = vsel %vm283_vm3, %v2849_v6, -inf  ;;  %v2877_v27 = vadd.f32 %v536_v7, %v2858_v12 }
 0x1e9   :  { %291 = vmax.xlane.f32.xlu2 %v290_v8  ;;  %555 = vmax.xlane.f32.xlu1 %v554_v9 }
 0x1ea   :  { %v557_v35 = vsel %vm283_vm3, %v2877_v27, -inf }
 0x1ed   :  { %v271_v13 = vpop.f32.mrf.mxu2 }
 0x1ee   :  { %v272_v14 = vadd.f32 %v271_v13, %v2858_v12 }
 0x1ef   :  { %v539_v15 = vpop.f32.mrf.mxu1 }
 0x1f0   :  { %v293_v16 = vsel %vm283_vm3, %v272_v14, -inf  ;;  %v2889_v37 = vadd.f32 %v539_v15, %v2866_v19 }
 0x1f1   :  { %294 = vmax.xlane.f32.xlu2 %v293_v16 }
 0x1f2   :  { %v560_v40 = vsel %vm283_vm3, %v2889_v37, -inf }
 0x1f5   :  { %v274_v20 = vpop.f32.mrf.mxu2 }
 0x1f6   :  { %v275_v21 = vadd.f32 %v274_v20, %v2866_v19 }
 0x1f7   :  { %v541_v22 = vpop.f32.mrf.mxu1 }
 0x1f8   :  { %v296_v24 = vsel %vm283_vm3, %v275_v21, -inf  ;;  %v2880_v29 = vadd.f32 %v541_v22, %v2874_v26 }
 0x1f9   :  { %297 = vmax.xlane.f32.xlu0 %v296_v24  ;;  %549 = vmax.xlane.f32.xlu2 %v548_v25 }
 0x1fa   :  { %v563_v36 = vsel %vm283_vm3, %v2880_v29, -inf }
 0x1fd   :  { %v276_v32 = vpop.f32.mrf.mxu2 }
 0x1fe   :  { %v2909_v47 = vadd.f32 %v276_v32, %v2874_v26 }
 0x1ff   :  { %v544_v34 = vpop.f32.mrf.mxu1 }
 0x200   :  { %v2904_v45 = vadd.f32 %v544_v34, %v2896_v41  ;;  %v299_v48 = vsel %vm283_vm3, %v2909_v47, -inf }
 0x201   :  { %558 = vmax.xlane.f32.xlu2 %v557_v35  ;;  %564 = vmax.xlane.f32.xlu0 %v563_v36 }
 0x202   :  { %635 = vrot.lane.b32.xlu1 %v2759_v11, %s2641_s18  ;;  %v566_v46 = vsel %vm283_vm3, %v2904_v45, -inf }
 0x205   :  { %v279_v38 = vpop.f32.mrf.mxu2 }
 0x206   :  { %v2899_v42 = vadd.f32 %v279_v38, %v2896_v41 }
 0x207   :  { %v546_v39 = vpop.f32.mrf.mxu1 }
 0x208   :  { %v302_v44 = vsel %vm283_vm3, %v2899_v42, -inf }
 0x209   :  { %561 = vmax.xlane.f32.xlu2 %v560_v40 }
 0x20d   :  { %v281_v43 = vpop.f32.mrf.mxu2 }
 0x211   :  { %303 = vmax.xlane.f32.xlu2 %v302_v44 }
 0x219   :  { %567 = vmax.xlane.f32.xlu2 %v566_v46 }
 0x22c   :  { %300 = vmax.xlane.f32.xlu1 %v299_v48 }
 0x24c   :  { %v286_v49 = vpop.xlane.xlu0 %285 }
 0x24d   :  { %v305_v22 = vsub.f32 %v2824_v57, %v286_v49 }
 0x254   :  { %v553_v50 = vpop.xlane.xlu0 %552  ;;  %v289_v51 = vpop.xlane.xlu1 %288 }
 0x255   :  { %v570_v52 = vsub.f32 %v2834_v61, %v553_v50  ;;  %v306_v53 = vsub.f32 %v267_v63, %v289_v51 }
 0x257   :  { %v578_v54 = vmul.f32 1.442695, %v570_v52  ;;  %v314_v56 = vmul.f32 1.442695, %v306_v53 }
 0x259   :  { %2476 = vpow2.f32 %v578_v54 }
 0x25a   :  { %2478 = vpow2.f32 %v314_v56 }
 0x25c   :  { %v292_v58 = vpop.xlane.xlu2 %291  ;;  %v556_v8 = vpop.xlane.xlu1 %555 }
 0x25d   :  { %v307_v57 = vsub.f32 %v2849_v6, %v292_v58  ;;  %v571_v56 = vsub.f32 %v2846_v4, %v556_v8 }
 0x25f   :  { %v2914_v59 = vpop.eup %2476  ;;  %v316_v38 = vmul.f32 1.442695, %v307_v57 }
 0x260   :  { %v2916_v62 = vpop.eup %2478  ;;  %v593_v0 = vsel %vm283_vm3, %v2914_v59, 0.0 }
 0x261   :  { %594 = vadd.xlane.f32.xlu2 %v593_v0  ;;  %v329_v1 = vsel %vm283_vm3, %v2916_v62, 0.0  ;;  %v580_v0 = vmul.f32 1.442695, %v571_v56 }
 0x262   :  { %330 = vadd.xlane.f32.xlu1 %v329_v1 }
 0x264   :  { %v295_v2 = vpop.xlane.xlu2 %294 }
 0x265   :  { %v308_v61 = vsub.f32 %v272_v14, %v295_v2  ;;  %v312_v14 = vmul.f32 1.442695, %v305_v22 }
 0x267   :  { %v318_v63 = vmul.f32 1.442695, %v308_v61 }
 0x269   :  { %2480 = vpow2.f32 %v318_v63 }
 0x26c   :  { %v298_v5 = vpop.xlane.xlu0 %297  ;;  %v550_v7 = vpop.xlane.xlu2 %549 }
 0x26d   :  { %v309_v9 = vsub.f32 %v275_v21, %v298_v5  ;;  %v569_v13 = vsub.f32 %v530_v18, %v550_v7 }
 0x26f   :  { %v2922_v15 = vpop.eup %2480  ;;  %v320_v16 = vmul.f32 1.442695, %v309_v9  ;;  %v576_v20 = vmul.f32 1.442695, %v569_v13 }
 0x270   :  { %v335_v24 = vsel %vm283_vm3, %v2922_v15, 0.0 }
 0x271   :  { %2482 = vpow2.f32 %v320_v16  ;;  %336 = vadd.xlane.f32.xlu1 %v335_v24 }
 0x272   :  { %2484 = vpow2.f32 %v576_v20 }
 0x273   :  { %2486 = vpow2.f32 %v312_v14 }
 0x274   :  { %v559_v25 = vpop.xlane.xlu2 %558  ;;  %v636_v32 = vpop.permute.xlu1 %635  ;;  %2488 = vpow2.f32 %v316_v38 }
 0x275   :  { %v653_v34 = vsel %vm391_vm1, %v636_v32, 0  ;;  %v565_v1 = vpop.xlane.xlu0 %564  ;;  %v572_v5 = vsub.f32 %v2877_v27, %v559_v25 }
 0x276   :  { %659 = vmatpush.bf16.msra.mxu1 %v653_v34  ;;  %2464 = vmatpush.bf16.msrb.mxu3 %v653_v34  ;;  %v574_v2 = vsub.f32 %v2880_v29, %v565_v1 }
 0x277   :  { %v2928_v35 = vpop.eup %2482  ;;  %v582_v7 = vmul.f32 1.442695, %v572_v5 }
 0x278   :  { %v2930_v18 = vpop.eup %2484  ;;  %v338_v21 = vsel %vm283_vm3, %v2928_v35, 0.0  ;;  %v586_v61 = vmul.f32 1.442695, %v574_v2 }
 0x279   :  { %v590_v36 = vsel %vm283_vm3, %v2930_v18, 0.0  ;;  %339 = vadd.xlane.f32.xlu1 %v338_v21  ;;  %v2937_v40 = vpop.eup %2486 }
 0x27a   :  { %591 = vadd.xlane.f32.xlu0 %v590_v36  ;;  %v326_v43 = vsel %vm283_vm3, %v2937_v40, 0.0  ;;  %v2942_v46 = vpop.eup %2488 }
 0x27b   :  { %v332_v49 = vsel %vm283_vm3, %v2942_v46, 0.0 }
 0x27c   :  { %v562_v39 = vpop.xlane.xlu2 %561 }
 0x27d   :  { %v573_v24 = vsub.f32 %v2889_v37, %v562_v39 }
 0x282   :  { %327 = vadd.xlane.f32.xlu0 %v326_v43 }
 0x284   :  { %v304_v44 = vpop.xlane.xlu2 %303 }
 0x285   :  { %v311_v6 = vsub.f32 %v2899_v42, %v304_v44 }
 0x287   :  { %v324_v48 = vmul.f32 1.442695, %v311_v6 }
 0x289   :  { %2490 = vpow2.f32 %v324_v48 }
 0x28a   :  { %333 = vadd.xlane.f32.xlu0 %v332_v49 }
 0x28c   :  { %v568_v8 = vpop.xlane.xlu2 %567 }
 0x28d   :  { %v575_v29 = vsub.f32 %v2904_v45, %v568_v8  ;;  %v584_v45 = vmul.f32 1.442695, %v573_v24  ;;  %v2425_v8 = vld [vmem:[%s3831_s2 + $0x54] sm:$0xf0] }
 0x28f   :  { %v2946_v50 = vpop.eup %2490  ;;  %v588_v13 = vmul.f32 1.442695, %v575_v29 }
 0x290   :  { %v344_v51 = vsel %vm283_vm3, %v2946_v50, 0.0 }
 0x292   :  { %345 = vadd.xlane.f32.xlu0 %v344_v51  ;;  %629 = vrot.lane.b32.xlu1 %v2783_v33, %s2641_s18 }
 0x29f   :  { %v301_v52 = vpop.xlane.xlu1 %300 }
 0x2a0   :  { %v310_v42 = vsub.f32 %v2909_v47, %v301_v52 }
 0x2a2   :  { %v322_v53 = vmul.f32 1.442695, %v310_v42 }
 0x2a4   :  { %2492 = vpow2.f32 %v322_v53 }
 0x2a5   :  { %2494 = vpow2.f32 %v580_v0 }
 0x2a6   :  { %633 = vrot.lane.b32.xlu0 %v2769_v23, %s2641_s18  ;;  %2496 = vpow2.f32 %v586_v61 }
 0x2a7   :  { %2498 = vpow2.f32 %v582_v7  ;;  %v2254_v7 = vld [vmem:[%s3831_s2 + $0x40] sm:$0xf] }
 0x2a8   :  { %2500 = vpow2.f32 %v588_v13  ;;  %v2255_v29 = vor.u32 %v2425_v8, %v2254_v7 }
 0x2a9   :  { %2502 = vpow2.f32 %v584_v45 }
 0x2aa   :  { %v2955_v54 = vpop.eup %2492  ;;  %712 = vmatpush.bf16.msra.mxu2 %v2255_v29 }
 0x2ab   :  { %v341_v58 = vsel %vm283_vm3, %v2955_v54, 0.0  ;;  %v2961_v47 = vpop.eup %2494 }
 0x2ac   :  { %342 = vadd.xlane.f32.xlu2 %v341_v58  ;;  %v596_v63 = vsel %vm283_vm3, %v2961_v47, 0.0  ;;  %v2966_v4 = vpop.eup %2496 }
 0x2ad   :  { %v605_v9 = vsel %vm283_vm3, %v2966_v4, 0.0  ;;  %v2973_v16 = vpop.eup %2498 }
 0x2ae   :  { %v599_v27 = vsel %vm283_vm3, %v2973_v16, 0.0  ;;  %v2977_v20 = vpop.eup %2500 }
 0x2af   :  { %v608_v22 = vsel %vm283_vm3, %v2977_v20, 0.0  ;;  %v2986_v14 = vpop.eup %2502 }
 0x2b0   :  { %v602_v25 = vsel %vm283_vm3, %v2986_v14, 0.0 }
 0x2bc   :  { %597 = vadd.xlane.f32.xlu1 %v596_v63 }
 0x2c4   :  { %606 = vadd.xlane.f32.xlu1 %v605_v9  ;;  %631 = vrot.lane.b32.xlu2 %v2774_v30, %s2641_s18 }
 0x2d0   :  { %600 = vadd.xlane.f32.xlu0 %v599_v27 }
 0x2d4   :  { %v595_v52 = vpop.xlane.xlu2 %594 }
 0x2d5   :  { %v331_v37 = vpop.xlane.xlu1 %330 }
 0x2d6   :  { %2504 = vrcp.f32 %v331_v37 }
 0x2d8   :  { %609 = vadd.xlane.f32.xlu0 %v608_v22 }
 0x2dc   :  { %v2505_v57 = vpop.eup %2504 }
 0x2dd   :  { %754 = vrot.lane.b32.xlu1 %v2757_v10, %s2642_s1  ;;  %v355_v38 = vmul.f32 %v2505_v57, %v2916_v62 }
 0x2e4   :  { %v337_v44 = vpop.xlane.xlu1 %336 }
 0x2e5   :  { %750 = vrot.lane.b32.xlu1 %v2761_v17, %s2642_s1 }
 0x2ec   :  { %1014 = vrot.lane.b32.xlu0 %v2757_v10, %s2643_s8 }
 0x2ed   :  { %v592_v32 = vpop.xlane.xlu0 %591  ;;  %1008 = vrot.lane.b32.xlu1 %v2776_v31, %s2643_s8  ;;  %603 = vadd.xlane.f32.xlu2 %v602_v25 }
 0x2f4   :  { %1012 = vrot.lane.b32.xlu0 %v2772_v28, %s2643_s8 }
 0x2f5   :  { %v328_v34 = vpop.xlane.xlu0 %327  ;;  %742 = vrot.lane.b32.xlu1 %v2761_v17, %s2644_s9 }
 0x2f6   :  { %2506 = vrcp.f32 %v328_v34 }
 0x2fc   :  { %v2507_v21 = vpop.eup %2506  ;;  %748 = vrot.lane.b32.xlu0 %v2776_v31, %s2642_s1 }
 0x2fd   :  { %1004 = vrot.lane.b32.xlu1 %v2772_v28, %s2645_s10  ;;  %v354_v36 = vmul.f32 %v2507_v21, %v2937_v40  ;;  %v334_v39 = vpop.xlane.xlu0 %333 }
 0x2fe   :  { %2508 = vrcp.f32 %v334_v39 }
 0x2ff   :  { %v361_v43 = vpack.c.bf16 %v355_v38, %v354_v36  ;;  %2510 = vrcp.f32 %v337_v44 }
 0x301   :  { %2232 = vmatmul.msk.bf16.vlgmr.msra.gmra.mxu3 %vm283_vm3, %v361_v43 }
 0x304   :  { %1000 = vrot.lane.b32.xlu0 %v2776_v31, %s2645_s10  ;;  %v2509_v6 = vpop.eup %2508 }
 0x305   :  { %895 = vrot.lane.b32.xlu1 %v2759_v11, %s2644_s9  ;;  %752 = vrot.lane.b32.xlu2 %v2772_v28, %s2642_s1  ;;  %v2511_v40 = vpop.eup %2510  ;;  %v356_v62 = vmul.f32 %v2509_v6, %v2942_v46  ;;  %v346_v51 = vpop.xlane.xlu0 %345 }
 0x306   :  { %v357_v48 = vmul.f32 %v2511_v40, %v2922_v15 }
 0x308   :  { %v362_v49 = vpack.c.bf16 %v357_v48, %v356_v62 }
 0x30c   :  { %744 = vrot.lane.b32.xlu0 %v2772_v28, %s2644_s9  ;;  %v340_v28 = vpop.xlane.xlu1 %339 }
 0x30d   :  { %1010 = vrot.lane.b32.xlu2 %v2761_v17, %s2643_s8  ;;  %2512 = vrcp.f32 %v340_v28 }
 0x30e   :  { %2514 = vrcp.f32 %v592_v32 }
 0x311   :  { %2233 = vmatmul.msk.bf16.gmra.mxu3 %vm283_vm3, %v362_v49 }
 0x313   :  { %v2513_v42 = vpop.eup %2512 }
 0x314   :  { %1006 = vrot.lane.b32.xlu0 %v2757_v10, %s2645_s10  ;;  %v2515_v53 = vpop.eup %2514  ;;  %v358_v58 = vmul.f32 %v2513_v42, %v2928_v35  ;;  %v630_v61 = vpop.permute.xlu1 %629  ;;  %v2238_v35 = vld [vmem:[%s3831_s2 + $0x10] sm:$0xf] }
 0x315   :  { %740 = vrot.lane.b32.xlu2 %v2776_v31, %s2644_s9 }
 0x318   :  { %v634_v46 = vpop.permute.xlu0 %633 }
 0x319   :  { %660 = vmatpush.bf16.msra.mxu1 %v634_v46  ;;  %2465 = vmatpush.bf16.msrb.mxu3 %v634_v46 }
 0x31c   :  { %1155 = vrot.lane.b32.xlu0 %v2759_v11, %s2645_s10 }
 0x31d   :  { %1002 = vrot.lane.b32.xlu2 %v2761_v17, %s2645_s10  ;;  %v618_v17 = vmul.f32 %v2515_v53, %v2930_v18  ;;  %v2424_v18 = vld [vmem:[%s3831_s2 + $0x24] sm:$0xf0] }
 0x31f   :  { %v343_v15 = vpop.xlane.xlu2 %342 }
 0x320   :  { %2516 = vrcp.f32 %v343_v15 }
 0x321   :  { %2518 = vrcp.f32 %v595_v52 }
 0x322   :  { %2520 = vrcp.f32 %v346_v51 }
 0x325   :  { %746 = vrot.lane.b32.xlu2 %v2757_v10, %s2644_s9 }
 0x326   :  { %v2517_v31 = vpop.eup %2516 }
 0x327   :  { %v632_v56 = vpop.permute.xlu2 %631  ;;  %v359_v0 = vmul.f32 %v2517_v31, %v2955_v54  ;;  %v2519_v11 = vpop.eup %2518 }
 0x328   :  { %661 = vmatpush.bf16.msra.mxu1 %v632_v56  ;;  %2466 = vmatpush.bf16.msrb.mxu3 %v632_v56  ;;  %v619_v2 = vmul.f32 %v2519_v11, %v2914_v59  ;;  %v2239_v59 = vor.u32 %v2424_v18, %v2238_v35  ;;  %v2521_v54 = vpop.eup %2520 }
 0x329   :  { %v363_v1 = vpack.c.bf16 %v359_v0, %v358_v58  ;;  %v360_v63 = vmul.f32 %v2521_v54, %v2946_v50 }
 0x32a   :  { %v625_v10 = vpack.c.bf16 %v619_v2, %v618_v17  ;;  %452 = vmatpush.bf16.msra.mxu0 %v2239_v59 }
 0x32b   :  { %2234 = vmatmul.msk.bf16.gmra.mxu3 %vm283_vm3, %v363_v1  ;;  %v364_v5 = vpack.c.bf16 %v360_v63, %v360_v63 }
 0x32c   :  { %662 = vmatpush.bf16.msra.mxu1 %v630_v61  ;;  %2467 = vmatpush.bf16.msrb.mxu3 %v630_v61 }
 0x32d   :  { %893 = vrot.lane.b32.xlu2 %v2769_v23, %s2644_s9 }
 0x32f   :  { %2248 = vmatmul.msk.bf16.vlgmr.msra.gmra.mxu1 %vm283_vm3, %v625_v10  ;;  %v598_v9 = vpop.xlane.xlu1 %597 }
 0x330   :  { %2522 = vrcp.f32 %v598_v9 }
 0x336   :  { %v2523_v22 = vpop.eup %2522 }
 0x337   :  { %v607_v27 = vpop.xlane.xlu1 %606  ;;  %v620_v24 = vmul.f32 %v2523_v22, %v2961_v47 }
 0x33b   :  { %2235 = vmatmul.msk.bf16.gmra.mxu3 %vm283_vm3, %v364_v5 }
 0x343   :  { %v601_v13 = vpop.xlane.xlu0 %600 }
 0x344   :  { %2524 = vrcp.f32 %v601_v13 }
 0x345   :  { %2526 = vrcp.f32 %v607_v27 }
 0x34a   :  { %v2525_v50 = vpop.eup %2524 }
 0x34b   :  { %v621_v45 = vmul.f32 %v2525_v50, %v2973_v16  ;;  %v610_v34 = vpop.xlane.xlu0 %609  ;;  %v2527_v47 = vpop.eup %2526 }
 0x34c   :  { %v623_v48 = vmul.f32 %v2527_v47, %v2966_v4 }
 0x34d   :  { %v626_v25 = vpack.c.bf16 %v621_v45, %v620_v24 }
 0x34f   :  { %2249 = vmatmul.msk.bf16.vlgmr.msrb.gmra.mxu3 %vm283_vm3, %v626_v25  ;;  %v755_v32 = vpop.permute.xlu1 %754 }
 0x350   :  { %v778_v37 = vsel %vm230_vm2, %v755_v32, 0 }
 0x351   :  { %784 = vmatpush.bf16.xpose.msrb.mxu0 %v778_v37 }
 0x357   :  { %v751_v57 = vpop.permute.xlu1 %750 }
 0x358   :  { %v772_v15 = vsel %vm230_vm2, %v751_v57, 0 }
 0x35e   :  { %v1015_v21 = vpop.permute.xlu0 %1014 }
 0x35f   :  { %v1038_v36 = vsel %vm230_vm2, %v1015_v21, 0  ;;  %v1009_v38 = vpop.permute.xlu1 %1008 }
 0x360   :  { %1044 = vmatpush.bf16.xpose.msrb.mxu2 %v1038_v36  ;;  %v604_v39 = vpop.xlane.xlu2 %603  ;;  %v1029_v0 = vsel %vm230_vm2, %v1009_v38, 0 }
 0x361   :  { %2528 = vrcp.f32 %v604_v39 }
 0x362   :  { %2530 = vrcp.f32 %v610_v34 }
 0x366   :  { %v1013_v43 = vpop.permute.xlu0 %1012 }
 0x367   :  { %v2529_v16 = vpop.eup %2528  ;;  %v1035_v44 = vsel %vm230_vm2, %v1013_v43, 0  ;;  %v3056_v6 = vpop.permute.xlu1 %742 }
 0x368   :  { %1045 = vmatpush.bf16.xpose.msrb.mxu2 %v1035_v44  ;;  %v753_v40 = vpop.permute.xlu2 %752  ;;  %v622_v62 = vmul.f32 %v2529_v16, %v2986_v14  ;;  %v2531_v14 = vpop.eup %2530 }
 0x369   :  { %v775_v49 = vsel %vm230_vm2, %v753_v40, 0  ;;  %v624_v4 = vmul.f32 %v2531_v14, %v2977_v20  ;;  %v3094_v40 = vld [vmem:[%s3833_s4 + $0x2] ss:$0 sm:$0xff] }
 0x36a   :  { %785 = vmatpush.bf16.xpose.msrb.mxu0 %v775_v49  ;;  %v627_v51 = vpack.c.bf16 %v623_v48, %v622_v62 }
 0x36b   :  { %v628_v17 = vpack.c.bf16 %v624_v4, %v624_v4 }
 0x36c   :  { %2250 = vmatmul.msk.bf16.gmra.mxu3 %vm283_vm3, %v627_v51 }
 0x36e   :  { %v749_v52 = vpop.permute.xlu0 %748 }
 0x36f   :  { %v3062_v46 = vpop.permute.xlu1 %1004  ;;  %v769_v11 = vsel %vm230_vm2, %v749_v52, 0 }
 0x370   :  { %v1011_v28 = vpop.permute.xlu2 %1010 }
 0x371   :  { %v1032_v42 = vsel %vm230_vm2, %v1011_v28, 0 }
 0x372   :  { %786 = vmatpush.bf16.xpose.msrb.mxu0 %v772_v15  ;;  %1046 = vmatpush.bf16.xpose.msrb.mxu2 %v1032_v42 }
 0x376   :  { %v1001_v53 = vpop.permute.xlu0 %1000 }
 0x377   :  { %v896_v31 = vpop.permute.xlu1 %895 }
 0x378   :  { %v913_v56 = vsel %vm391_vm1, %v896_v31, 0  ;;  %v741_v58 = vpop.permute.xlu2 %740 }
 0x379   :  { %919 = vmatpush.bf16.msrb.mxu1 %v913_v56 }
 0x37a   :  { %787 = vmatpush.bf16.xpose.msrb.mxu0 %v769_v11  ;;  %1047 = vmatpush.bf16.xpose.msrb.mxu2 %v1029_v0 }
 0x37c   :  { %2251 = vmatmul.msk.bf16.gmra.mxu3 %vm283_vm3, %v628_v17 }
 0x37e   :  { %v745_v1 = vpop.permute.xlu0 %744 }
 0x380   :  { %v1003_v2 = vpop.permute.xlu2 %1002 }
 0x384   :  { %v404_v61 = vpop.f32.mrf.mxu3 }
 0x386   :  { %v1007_v10 = vpop.permute.xlu0 %1006 }
 0x388   :  { %v747_v35 = vpop.permute.xlu2 %746 }
 0x38c   :  { %v406_v20 = vpop.f32.mrf.mxu3 }
 0x38d   :  { %v423_v18 = vpack.c.bf16 %v406_v20, %v404_v61 }
 0x38e   :  { %v1156_v59 = vpop.permute.xlu0 %1155 }
 0x38f   :  { %v1173_v54 = vsel %vm391_vm1, %v1156_v59, 0  ;;  %2240 = vmatmul.msk.bf16.vlgmr.msra.gmra.mxu0 %vm230_vm2, %v423_v18 }
 0x390   :  { %1179 = vmatpush.bf16.msra.mxu0 %v1173_v54  ;;  %v894_v63 = vpop.permute.xlu2 %893 }
 0x391   :  { %920 = vmatpush.bf16.msrb.mxu1 %v894_v63 }
 0x394   :  { %v409_v5 = vpop.f32.mrf.mxu3 }
 0x39c   :  { %v411_v7 = vpop.f32.mrf.mxu3 }
 0x39d   :  { %v424_v8 = vpack.c.bf16 %v411_v7, %v409_v5 }
 0x39f   :  { %2241 = vmatmul.msk.bf16.gmra.mxu0 %vm230_vm2, %v424_v8 }
 0x3ac   :  { %v664_v9 = vpop.f32.mrf.mxu1 }
 0x3ae   :  { %v414_v29 = vpop.f32.mrf.mxu3 }
 0x3b4   :  { %v666_v13 = vpop.f32.mrf.mxu1 }
 0x3b5   :  { %v683_v27 = vpack.c.bf16 %v666_v13, %v664_v9 }
 0x3b6   :  { %v416_v22 = vpop.f32.mrf.mxu3 }
 0x3b7   :  { %v425_v50 = vpack.c.bf16 %v416_v22, %v414_v29  ;;  %2256 = vmatmul.msk.bf16.vlgmr.msra.gmra.mxu2 %vm230_vm2, %v683_v27 }
 0x3b9   :  { %2242 = vmatmul.msk.bf16.gmra.mxu0 %vm230_vm2, %v425_v50 }
 0x3be   :  { %v419_v24 = vpop.f32.mrf.mxu3 }
 0x3bf   :  { %v426_v25 = vpack.c.bf16 %v419_v24, %v419_v24 }
 0x3c6   :  { %v421_v45 = vpop.f32.mrf.mxu3 }
 0x3c9   :  { %2243 = vmatmul.msk.bf16.gmra.mxu0 %vm230_vm2, %v426_v25 }
 0x3d2   :  { %v669_v32 = vpop.f32.mrf.mxu3 }
 0x3d9   :  { %2260 = vmatmul.msk.bf16.vlgmr.msrb.gmra.mxu0 %vm230_vm2, %v741_v58 }
 0x3da   :  { %v671_v37 = vpop.f32.mrf.mxu3 }
 0x3db   :  { %v684_v34 = vpack.c.bf16 %v671_v37, %v669_v32 }
 0x3dd   :  { %2257 = vmatmul.msk.bf16.gmra.mxu2 %vm230_vm2, %v684_v34 }
 0x3e9   :  { %2261 = vmatmul.msk.bf16.gmra.mxu0 %vm230_vm2, %v3056_v6 }
 0x3ef   :  { %v674_v57 = vpop.f32.mrf.mxu3 }
 0x3f7   :  { %v676_v21 = vpop.f32.mrf.mxu3 }
 0x3f8   :  { %v685_v36 = vpack.c.bf16 %v676_v21, %v674_v57 }
 0x3f9   :  { %2262 = vmatmul.msk.bf16.gmra.mxu0 %vm230_vm2, %v745_v1 }
 0x3fa   :  { %2258 = vmatmul.msk.bf16.gmra.mxu2 %vm230_vm2, %v685_v36 }
 0x3ff   :  { %v679_v38 = vpop.f32.mrf.mxu3 }
 0x400   :  { %v686_v47 = vpack.c.bf16 %v679_v38, %v679_v38 }
 0x407   :  { %v681_v39 = vpop.f32.mrf.mxu3 }
 0x409   :  { %2263 = vmatmul.msk.bf16.gmra.mxu0 %vm230_vm2, %v747_v35 }
 0x40a   :  { %2259 = vmatmul.msk.bf16.gmra.mxu2 %vm230_vm2, %v686_v47 }
 0x40c   :  { %v454_v43 = vpop.f32.mrf.mxu0 }
 0x40d   :  { %v473_v48 = vadd.f32 %v454_v43, %v3094_v40 }
 0x414   :  { %v3085_v16 = vpop.f32.mrf.mxu0 }
 0x41a   :  { %2276 = vmatmul.msk.bf16.vlgmr.msrb.gmra.mxu2 %vm230_vm2, %v1001_v53 }
 0x41c   :  { %v459_v44 = vpop.f32.mrf.mxu0 }
 0x41d   :  { %v475_v56 = vadd.f32 %v459_v44, %v3094_v40 }
 0x424   :  { %v3089_v6 = vpop.f32.mrf.mxu0 }
 0x42a   :  { %2277 = vmatmul.msk.bf16.gmra.mxu2 %vm230_vm2, %v1003_v2 }
 0x436   :  { %v464_v62 = vpop.f32.mrf.mxu0 }
 0x437   :  { %v477_v5 = vadd.f32 %v464_v62, %v3094_v40 }
 0x43a   :  { %v714_v49 = vpop.f32.mrf.mxu2  ;;  %2278 = vmatmul.msk.bf16.gmra.mxu2 %vm230_vm2, %v3062_v46 }
 0x43b   :  { %v3099_v51 = vadd.f32 %v714_v49, %v473_v48 }
 0x43e   :  { %v3101_v52 = vpop.f32.mrf.mxu0 }
 0x442   :  { %v3108_v4 = vpop.f32.mrf.mxu2 }
 0x446   :  { %v469_v28 = vpop.f32.mrf.mxu0 }
 0x447   :  { %v479_v15 = vadd.f32 %v469_v28, %v3094_v40 }
 0x44a   :  { %2279 = vmatmul.msk.bf16.gmra.mxu2 %vm230_vm2, %v1007_v10 }
 0x44e   :  { %v471_v42 = vpop.f32.mrf.mxu0 }
 0x456   :  { %v789_v14 = vpop.f32.mrf.mxu0 }
 0x457   :  { %v3106_v53 = vadd.f32 %v789_v14, %v2821_v55 }
 0x459   :  { %v808_v31 = vsel %vm283_vm3, %v3106_v53, -inf }
 0x45a   :  { %809 = vmax.xlane.f32.xlu1 %v808_v31 }
 0x45e   :  { %v791_v46 = vpop.f32.mrf.mxu0 }
 0x45f   :  { %v3114_v58 = vadd.f32 %v791_v46, %v2831_v60 }
 0x460   :  { %v719_v0 = vpop.f32.mrf.mxu2 }
 0x461   :  { %v3116_v11 = vadd.f32 %v719_v0, %v475_v56  ;;  %v811_v17 = vsel %vm283_vm3, %v3114_v58, -inf }
 0x462   :  { %812 = vmax.xlane.f32.xlu2 %v811_v17 }
 0x466   :  { %v794_v1 = vpop.f32.mrf.mxu0 }
 0x467   :  { %v3121_v2 = vadd.f32 %v794_v1, %v2843_v3 }
 0x468   :  { %v3130_v18 = vpop.f32.mrf.mxu2 }
 0x469   :  { %v814_v61 = vsel %vm283_vm3, %v3121_v2, -inf }
 0x46a   :  { %815 = vmax.xlane.f32.xlu2 %v814_v61 }
 0x46e   :  { %v796_v10 = vpop.f32.mrf.mxu0 }
 0x46f   :  { %v3126_v35 = vadd.f32 %v796_v10, %v2858_v12 }
 0x471   :  { %v817_v20 = vsel %vm283_vm3, %v3126_v35, -inf }
 0x472   :  { %818 = vmax.xlane.f32.xlu0 %v817_v20 }
 0x476   :  { %v799_v59 = vpop.f32.mrf.mxu0 }
 0x477   :  { %v3133_v54 = vadd.f32 %v799_v59, %v2866_v19 }
 0x479   :  { %v820_v63 = vsel %vm283_vm3, %v3133_v54, -inf }
 0x47a   :  { %821 = vmax.xlane.f32.xlu0 %v820_v63 }
 0x47d   :  { %v724_v7 = vpop.f32.mrf.mxu2 }
 0x47e   :  { %v3138_v8 = vadd.f32 %v724_v7, %v477_v5  ;;  %v801_v9 = vpop.f32.mrf.mxu0 }
 0x47f   :  { %v3141_v29 = vadd.f32 %v801_v9, %v2874_v26 }
 0x481   :  { %v823_v13 = vsel %vm283_vm3, %v3141_v29, -inf }
 0x482   :  { %824 = vmax.xlane.f32.xlu1 %v823_v13  ;;  %889 = vrot.lane.b32.xlu2 %v2783_v33, %s2644_s9 }
 0x485   :  { %v3147_v27 = vpop.f32.mrf.mxu2 }
 0x486   :  { %v3149_v22 = vpop.f32.mrf.mxu0 }
 0x48a   :  { %1153 = vrot.lane.b32.xlu2 %v2769_v23, %s2645_s10 }
 0x48d   :  { %v729_v50 = vpop.f32.mrf.mxu2 }
 0x48e   :  { %v3153_v24 = vadd.f32 %v729_v50, %v479_v15  ;;  %v806_v45 = vpop.f32.mrf.mxu0 }
 0x495   :  { %v731_v25 = vpop.f32.mrf.mxu2 }
 0x49d   :  { %v1049_v32 = vpop.f32.mrf.mxu2 }
 0x49e   :  { %v3156_v37 = vadd.f32 %v1049_v32, %v2821_v55 }
 0x4a0   :  { %v1068_v34 = vsel %vm283_vm3, %v3156_v37, -inf }
 0x4a1   :  { %1069 = vmax.xlane.f32.xlu0 %v1068_v34 }
 0x4a5   :  { %v1051_v57 = vpop.f32.mrf.mxu2 }
 0x4a6   :  { %v3161_v21 = vadd.f32 %v1051_v57, %v2831_v60 }
 0x4a8   :  { %v1071_v23 = vsel %vm283_vm3, %v3161_v21, -inf }
 0x4a9   :  { %1072 = vmax.xlane.f32.xlu1 %v1071_v23 }
 0x4ad   :  { %v1054_v36 = vpop.f32.mrf.mxu2 }
 0x4ae   :  { %v3166_v38 = vadd.f32 %v1054_v36, %v2843_v3 }
 0x4b0   :  { %v1074_v55 = vsel %vm283_vm3, %v3166_v38, -inf }
 0x4b1   :  { %1075 = vmax.xlane.f32.xlu1 %v1074_v55 }
 0x4b5   :  { %v1056_v39 = vpop.f32.mrf.mxu2 }
 0x4b6   :  { %v3171_v47 = vadd.f32 %v1056_v39, %v2858_v12 }
 0x4b8   :  { %v1077_v60 = vsel %vm283_vm3, %v3171_v47, -inf }
 0x4b9   :  { %1078 = vmax.xlane.f32.xlu2 %v1077_v60 }
 0x4bd   :  { %v1059_v43 = vpop.f32.mrf.mxu2 }
 0x4be   :  { %v3176_v44 = vadd.f32 %v1059_v43, %v2866_v19 }
 0x4c0   :  { %v1080_v3 = vsel %vm283_vm3, %v3176_v44, -inf }
 0x4c1   :  { %1081 = vmax.xlane.f32.xlu2 %v1080_v3 }
 0x4c5   :  { %v1061_v62 = vpop.f32.mrf.mxu2 }
 0x4c6   :  { %v3181_v48 = vadd.f32 %v1061_v62, %v2874_v26 }
 0x4c8   :  { %v1083_v12 = vsel %vm283_vm3, %v3181_v48, -inf }
 0x4c9   :  { %1084 = vmax.xlane.f32.xlu0 %v1083_v12 }
 0x4ca   :  { %891 = vrot.lane.b32.xlu1 %v2774_v30, %s2644_s9 }
 0x4cd   :  { %v3187_v49 = vpop.f32.mrf.mxu2  ;;  %v810_v28 = vpop.xlane.xlu1 %809 }
 0x4ce   :  { %v829_v19 = vsub.f32 %v3106_v53, %v810_v28 }
 0x4d0   :  { %v836_v15 = vmul.f32 1.442695, %v829_v19 }
 0x4d2   :  { %2532 = vpow2.f32 %v836_v15 }
 0x4d5   :  { %v813_v42 = vpop.xlane.xlu2 %812  ;;  %v1066_v14 = vpop.f32.mrf.mxu2 }
 0x4d6   :  { %v830_v31 = vsub.f32 %v3114_v58, %v813_v42 }
 0x4d8   :  { %v3191_v26 = vpop.eup %2532  ;;  %v838_v46 = vmul.f32 1.442695, %v830_v31 }
 0x4d9   :  { %v850_v56 = vsel %vm283_vm3, %v3191_v26, 0.0 }
 0x4da   :  { %2534 = vpow2.f32 %v838_v46  ;;  %851 = vadd.xlane.f32.xlu2 %v850_v56 }
 0x4dd   :  { %v816_v0 = vpop.xlane.xlu2 %815 }
 0x4de   :  { %v831_v5 = vsub.f32 %v3121_v2, %v816_v0 }
 0x4e0   :  { %v3195_v17 = vpop.eup %2534  ;;  %v840_v9 = vmul.f32 1.442695, %v831_v5 }
 0x4e1   :  { %v853_v53 = vsel %vm283_vm3, %v3195_v17, 0.0 }
 0x4e2   :  { %854 = vadd.xlane.f32.xlu0 %v853_v53 }
 0x4e5   :  { %v819_v1 = vpop.xlane.xlu0 %818  ;;  %v3199_v61 = vpop.permute.xlu2 %889 }
 0x4e6   :  { %v832_v58 = vsub.f32 %v3126_v35, %v819_v1 }
 0x4e8   :  { %v842_v10 = vmul.f32 1.442695, %v832_v58 }
 0x4ea   :  { %2536 = vpow2.f32 %v842_v10 }
 0x4eb   :  { %2538 = vpow2.f32 %v840_v9 }
 0x4ed   :  { %v1154_v20 = vpop.permute.xlu2 %1153  ;;  %v822_v7 = vpop.xlane.xlu0 %821 }
 0x4ee   :  { %1180 = vmatpush.bf16.msra.mxu0 %v1154_v20 }
 0x4f0   :  { %v3202_v59 = vpop.eup %2536 }
 0x4f1   :  { %v859_v63 = vsel %vm283_vm3, %v3202_v59, 0.0  ;;  %v3211_v32 = vpop.eup %2538 }
 0x4f2   :  { %1151 = vrot.lane.b32.xlu2 %v2774_v30, %s2645_s10  ;;  %v833_v30 = vsub.f32 %v3133_v54, %v822_v7  ;;  %v856_v2 = vsel %vm283_vm3, %v3211_v32, 0.0 }
 0x4f4   :  { %860 = vadd.xlane.f32.xlu1 %v859_v63  ;;  %v844_v57 = vmul.f32 1.442695, %v833_v30 }
 0x4f5   :  { %v825_v13 = vpop.xlane.xlu1 %824 }
 0x4f6   :  { %v834_v35 = vsub.f32 %v3141_v29, %v825_v13 }
 0x4f8   :  { %v846_v50 = vmul.f32 1.442695, %v834_v35 }
 0x4fa   :  { %2540 = vpow2.f32 %v846_v50 }
 0x500   :  { %v3217_v36 = vpop.eup %2540 }
 0x501   :  { %v865_v39 = vsel %vm283_vm3, %v3217_v36, 0.0 }
 0x514   :  { %v1070_v45 = vpop.xlane.xlu0 %1069 }
 0x515   :  { %v1089_v25 = vsub.f32 %v3156_v37, %v1070_v45 }
 0x517   :  { %v1096_v34 = vmul.f32 1.442695, %v1089_v25 }
 0x519   :  { %2542 = vpow2.f32 %v1096_v34 }
 0x51a   :  { %2544 = vpow2.f32 %v844_v57 }
 0x51b   :  { %857 = vadd.xlane.f32.xlu2 %v856_v2 }
 0x51c   :  { %v1073_v23 = vpop.xlane.xlu1 %1072 }
 0x51d   :  { %v1090_v29 = vsub.f32 %v3161_v21, %v1073_v23 }
 0x51f   :  { %v3219_v55 = vpop.eup %2542  ;;  %v1098_v37 = vmul.f32 1.442695, %v1090_v29 }
 0x520   :  { %v1110_v54 = vsel %vm283_vm3, %v3219_v55, 0.0  ;;  %v3225_v43 = vpop.eup %2544 }
 0x521   :  { %2546 = vpow2.f32 %v1098_v37  ;;  %1111 = vadd.xlane.f32.xlu1 %v1110_v54  ;;  %v862_v12 = vsel %vm283_vm3, %v3225_v43, 0.0 }
 0x523   :  { %866 = vadd.xlane.f32.xlu2 %v865_v39 }
 0x524   :  { %v1076_v60 = vpop.xlane.xlu1 %1075 }
 0x525   :  { %v1091_v21 = vsub.f32 %v3166_v38, %v1076_v60 }
 0x527   :  { %v3228_v3 = vpop.eup %2546  ;;  %v1100_v62 = vmul.f32 1.442695, %v1091_v21 }
 0x528   :  { %v1113_v28 = vsel %vm283_vm3, %v3228_v3, 0.0 }
 0x529   :  { %2548 = vpow2.f32 %v1100_v62  ;;  %863 = vadd.xlane.f32.xlu1 %v862_v12  ;;  %1114 = vadd.xlane.f32.xlu0 %v1113_v28 }
 0x52c   :  { %v1079_v19 = vpop.xlane.xlu2 %1078 }
 0x52d   :  { %v1092_v15 = vsub.f32 %v3171_v47, %v1079_v19  ;;  %v3246_v47 = vadd.f32 %v3187_v49, %v2896_v41 }
 0x52f   :  { %v3235_v42 = vpop.eup %2548  ;;  %v1102_v14 = vmul.f32 1.442695, %v1092_v15  ;;  %v1086_v5 = vsel %vm283_vm3, %v3246_v47, -inf }
 0x530   :  { %v1116_v38 = vsel %vm283_vm3, %v3235_v42, 0.0 }
 0x531   :  { %2550 = vpow2.f32 %v1102_v14  ;;  %1117 = vadd.xlane.f32.xlu1 %v1116_v38 }
 0x534   :  { %v1082_v31 = vpop.xlane.xlu2 %1081 }
 0x535   :  { %v1093_v46 = vsub.f32 %v3176_v44, %v1082_v31 }
 0x537   :  { %v3240_v56 = vpop.eup %2550  ;;  %v1104_v0 = vmul.f32 1.442695, %v1093_v46 }
 0x538   :  { %v1119_v53 = vsel %vm283_vm3, %v3240_v56, 0.0 }
 0x539   :  { %2552 = vpow2.f32 %v1104_v0  ;;  %1120 = vadd.xlane.f32.xlu1 %v1119_v53 }
 0x53c   :  { %v1085_v1 = vpop.xlane.xlu0 %1084  ;;  %v892_v58 = vpop.permute.xlu1 %891 }
 0x53d   :  { %v1094_v10 = vsub.f32 %v3181_v48, %v1085_v1  ;;  %1149 = vrot.lane.b32.xlu0 %v2783_v33, %s2645_s10  ;;  %921 = vmatpush.bf16.msrb.mxu1 %v892_v58 }
 0x53f   :  { %v3251_v44 = vpop.eup %2552  ;;  %v1106_v20 = vmul.f32 1.442695, %v1094_v10 }
 0x540   :  { %v1122_v63 = vsel %vm283_vm3, %v3251_v44, 0.0 }
 0x541   :  { %2554 = vpow2.f32 %v1106_v20  ;;  %1123 = vadd.xlane.f32.xlu2 %v1122_v63  ;;  %1087 = vmax.xlane.f32.xlu1 %v1086_v5 }
 0x542   :  { %922 = vmatpush.bf16.msrb.mxu1 %v3199_v61  ;;  %v3267_v61 = vadd.f32 %v3149_v22, %v2896_v41 }
 0x544   :  { %v826_v30 = vsel %vm283_vm3, %v3267_v61, -inf }
 0x547   :  { %v3258_v49 = vpop.eup %2554 }
 0x548   :  { %v1125_v33 = vsel %vm283_vm3, %v3258_v49, 0.0 }
 0x549   :  { %1126 = vadd.xlane.f32.xlu1 %v1125_v33 }
 0x54d   :  { %v852_v48 = vpop.xlane.xlu2 %851 }
 0x54e   :  { %2556 = vrcp.f32 %v852_v48 }
 0x554   :  { %v2557_v13 = vpop.eup %2556 }
 0x555   :  { %v855_v7 = vpop.xlane.xlu0 %854  ;;  %v1152_v9 = vpop.permute.xlu2 %1151  ;;  %v878_v50 = vmul.f32 %v2557_v13, %v3191_v26 }
 0x556   :  { %2558 = vrcp.f32 %v855_v7  ;;  %1181 = vmatpush.bf16.msra.mxu0 %v1152_v9 }
 0x55c   :  { %v2559_v35 = vpop.eup %2558 }
 0x55d   :  { %v879_v45 = vmul.f32 %v2559_v35, %v3195_v17 }
 0x55f   :  { %v885_v25 = vpack.c.bf16 %v879_v45, %v878_v50 }
 0x561   :  { %2264 = vmatmul.msk.bf16.vlgmr.msrb.gmra.mxu1 %vm283_vm3, %v885_v25 }
 0x567   :  { %827 = vmax.xlane.f32.xlu0 %v826_v30  ;;  %v861_v34 = vpop.xlane.xlu1 %860 }
 0x568   :  { %2560 = vrcp.f32 %v861_v34 }
 0x56e   :  { %v2561_v57 = vpop.eup %2560 }
 0x56f   :  { %v881_v29 = vmul.f32 %v2561_v57, %v3202_v59 }
 0x58e   :  { %v858_v2 = vpop.xlane.xlu2 %857 }
 0x58f   :  { %2562 = vrcp.f32 %v858_v2 }
 0x594   :  { %v1112_v23 = vpop.xlane.xlu1 %1111 }
 0x595   :  { %v2563_v26 = vpop.eup %2562 }
 0x596   :  { %v880_v17 = vmul.f32 %v2563_v26, %v3211_v32  ;;  %v867_v54 = vpop.xlane.xlu2 %866 }
 0x597   :  { %2564 = vrcp.f32 %v867_v54 }
 0x598   :  { %v886_v37 = vpack.c.bf16 %v881_v29, %v880_v17 }
 0x59a   :  { %2265 = vmatmul.msk.bf16.gmra.mxu1 %vm283_vm3, %v886_v37 }
 0x59c   :  { %v864_v41 = vpop.xlane.xlu1 %863  ;;  %v1115_v22 = vpop.xlane.xlu0 %1114 }
 0x59d   :  { %2566 = vrcp.f32 %v864_v41  ;;  %v2565_v39 = vpop.eup %2564 }
 0x59e   :  { %2568 = vrcp.f32 %v1115_v22  ;;  %v883_v12 = vmul.f32 %v2565_v39, %v3217_v36 }
 0x59f   :  { %2570 = vrcp.f32 %v1112_v23  ;;  %v2286_v23 = vld [vmem:[%s3831_s2 + $0xa0] sm:$0xf] }
 0x5a3   :  { %v2567_v60 = vpop.eup %2566 }
 0x5a4   :  { %v1118_v21 = vpop.xlane.xlu1 %1117  ;;  %v882_v62 = vmul.f32 %v2567_v60, %v3225_v43  ;;  %v2569_v28 = vpop.eup %2568 }
 0x5a5   :  { %v2571_v59 = vpop.eup %2570  ;;  %v1139_v15 = vmul.f32 %v2569_v28, %v3228_v3 }
 0x5a6   :  { %v887_v32 = vpack.c.bf16 %v883_v12, %v882_v62  ;;  %v1138_v14 = vmul.f32 %v2571_v59, %v3219_v55 }
 0x5a8   :  { %v1145_v31 = vpack.c.bf16 %v1139_v15, %v1138_v14 }
 0x5aa   :  { %2266 = vmatmul.msk.bf16.gmra.mxu1 %vm283_vm3, %v887_v32 }
 0x5ac   :  { %v1121_v19 = vpop.xlane.xlu1 %1120 }
 0x5ad   :  { %2572 = vrcp.f32 %v1121_v19 }
 0x5ae   :  { %2574 = vrcp.f32 %v1118_v21 }
 0x5af   :  { %v1150_v38 = vpop.permute.xlu0 %1149 }
 0x5b0   :  { %1182 = vmatpush.bf16.msra.mxu0 %v1150_v38 }
 0x5b3   :  { %2280 = vmatmul.msk.bf16.vlgmr.msra.gmra.mxu0 %vm283_vm3, %v1145_v31  ;;  %v2573_v0 = vpop.eup %2572 }
 0x5b4   :  { %v1088_v43 = vpop.xlane.xlu1 %1087  ;;  %v2575_v53 = vpop.eup %2574  ;;  %v1141_v1 = vmul.f32 %v2573_v0, %v3240_v56  ;;  %v2426_v56 = vld [vmem:[%s3831_s2 + $0x84] sm:$0xf0] }
 0x5b5   :  { %v1095_v46 = vsub.f32 %v3246_v47, %v1088_v43  ;;  %v1140_v3 = vmul.f32 %v2575_v53, %v3235_v42  ;;  %v1124_v63 = vpop.xlane.xlu2 %1123  ;;  %v2270_v47 = vld [vmem:[%s3831_s2 + $0x70] sm:$0xf] }
 0x5b6   :  { %v2271_v5 = vor.u32 %v2426_v56, %v2270_v47  ;;  %v474_v47 = vadd.f32 %v3085_v16, %v3094_v40  ;;  %v2632_v56 = vld [vmem:[%s3832_s0] sm:$0xff]  ;;  %v2633_v16 = vld [vmem:[%s3832_s0 + $0x8] sm:$0xff] }
 0x5b7   :  { %v1108_v36 = vmul.f32 1.442695, %v1095_v46  ;;  %v1146_v20 = vpack.c.bf16 %v1141_v1, %v1140_v3 }
 0x5b8   :  { %972 = vmatpush.bf16.msra.mxu3 %v2271_v5 }
 0x5b9   :  { %2576 = vpow2.f32 %v1108_v36 }
 0x5bc   :  { %v1127_v10 = vpop.xlane.xlu1 %1126 }
 0x5bd   :  { %2578 = vrcp.f32 %v1127_v10 }
 0x5be   :  { %2580 = vrcp.f32 %v1124_v63 }
 0x5bf   :  { %v2577_v58 = vpop.eup %2576 }
 0x5c0   :  { %v1128_v55 = vsel %vm283_vm3, %v2577_v58, 0.0 }
 0x5c1   :  { %1129 = vadd.xlane.f32.xlu1 %v1128_v55 }
 0x5c3   :  { %2281 = vmatmul.msk.bf16.gmra.mxu0 %vm283_vm3, %v1146_v20  ;;  %v2579_v42 = vpop.eup %2578 }
 0x5c4   :  { %v2581_v33 = vpop.eup %2580  ;;  %v1143_v48 = vmul.f32 %v2579_v42, %v3258_v49  ;;  %v734_v42 = vadd.f32 %v3108_v4, %v474_v47 }
 0x5c5   :  { %v1142_v7 = vmul.f32 %v2581_v33, %v3251_v44 }
 0x5c7   :  { %v1147_v9 = vpack.c.bf16 %v1143_v48, %v1142_v7 }
 0x5d3   :  { %2282 = vmatmul.msk.bf16.gmra.mxu0 %vm283_vm3, %v1147_v9 }
 0x5da   :  { %v828_v13 = vpop.xlane.xlu0 %827 }
 0x5db   :  { %v835_v35 = vsub.f32 %v3267_v61, %v828_v13  ;;  %v2427_v61 = vld [vmem:[%s3831_s2 + $0xb4] sm:$0xf0] }
 0x5dc   :  { %v2287_v26 = vor.u32 %v2427_v61, %v2286_v23 }
 0x5dd   :  { %v848_v50 = vmul.f32 1.442695, %v835_v35 }
 0x5de   :  { %v924_v45 = vpop.f32.mrf.mxu1  ;;  %1232 = vmatpush.bf16.msra.mxu1 %v2287_v26  ;;  %v2635_v26 = vld [vmem:[%s3832_s0 + $0x18] sm:$0xff] }
 0x5df   :  { %2582 = vpow2.f32 %v848_v50 }
 0x5e5   :  { %v2583_v25 = vpop.eup %2582 }
 0x5e6   :  { %v926_v30 = vpop.f32.mrf.mxu1  ;;  %v868_v34 = vsel %vm283_vm3, %v2583_v25, 0.0 }
 0x5e7   :  { %v943_v2 = vpack.c.bf16 %v926_v30, %v924_v45  ;;  %869 = vadd.xlane.f32.xlu2 %v868_v34  ;;  %v476_v30 = vadd.f32 %v3089_v6, %v3094_v40  ;;  %v2634_v34 = vld [vmem:[%s3832_s0 + $0x10] sm:$0xff] }
 0x5e9   :  { %2272 = vmatmul.msk.bf16.vlgmr.msra.gmra.mxu3 %vm230_vm2, %v943_v2 }
 0x617   :  { %v929_v49 = vpop.f32.mrf.mxu1 }
 0x61f   :  { %v931_v57 = vpop.f32.mrf.mxu1 }
 0x620   :  { %v944_v44 = vpack.c.bf16 %v931_v57, %v929_v49  ;;  %v736_v49 = vadd.f32 %v3130_v18, %v476_v30  ;;  %v478_v18 = vadd.f32 %v3101_v52, %v3094_v40 }
 0x622   :  { %2273 = vmatmul.msk.bf16.gmra.mxu3 %vm230_vm2, %v944_v44 }
 0x627   :  { %v934_v17 = vpop.f32.mrf.mxu1 }
 0x62f   :  { %v936_v29 = vpop.f32.mrf.mxu1 }
 0x630   :  { %v945_v37 = vpack.c.bf16 %v936_v29, %v934_v17  ;;  %v1184_v21 = vpop.f32.mrf.mxu0 }
 0x632   :  { %2274 = vmatmul.msk.bf16.gmra.mxu3 %vm230_vm2, %v945_v37 }
 0x634   :  { %v1130_v54 = vpop.xlane.xlu1 %1129 }
 0x635   :  { %2584 = vrcp.f32 %v1130_v54 }
 0x638   :  { %v1186_v28 = vpop.f32.mrf.mxu0 }
 0x639   :  { %v1203_v19 = vpack.c.bf16 %v1186_v28, %v1184_v21 }
 0x63b   :  { %v2585_v41 = vpop.eup %2584 }
 0x63c   :  { %v1144_v22 = vmul.f32 %v2585_v41, %v2577_v58  ;;  %v2636_v41 = vld [vmem:[%s3832_s0 + $0x20] sm:$0xff] }
 0x63e   :  { %v1148_v39 = vpack.c.bf16 %v1144_v22, %v1144_v22 }
 0x640   :  { %2283 = vmatmul.msk.bf16.gmra.mxu0 %vm283_vm3, %v1148_v39  ;;  %v1189_v59 = vpop.f32.mrf.mxu0 }
 0x648   :  { %v1191_v15 = vpop.f32.mrf.mxu0 }
 0x649   :  { %v1204_v14 = vpack.c.bf16 %v1191_v15, %v1189_v59 }
 0x650   :  { %v1194_v38 = vpop.f32.mrf.mxu0 }
 0x658   :  { %v1196_v31 = vpop.f32.mrf.mxu0 }
 0x659   :  { %v1205_v43 = vpack.c.bf16 %v1196_v31, %v1194_v38 }
 0x65a   :  { %v870_v60 = vpop.xlane.xlu2 %869 }
 0x65b   :  { %2586 = vrcp.f32 %v870_v60  ;;  %v738_v60 = vadd.f32 %v3147_v27, %v478_v18  ;;  %v2310_v18 = vld [vmem:[%s3831_s2 + $0x60] sm:$0xf] }
 0x661   :  { %v2587_v62 = vpop.eup %2586 }
 0x662   :  { %v884_v12 = vmul.f32 %v2587_v62, %v2583_v25 }
 0x664   :  { %v888_v32 = vpack.c.bf16 %v884_v12, %v884_v12 }
 0x666   :  { %2267 = vmatmul.msk.bf16.gmra.mxu1 %vm283_vm3, %v888_v32 }
 0x66c   :  { %v974_v58 = vpop.f32.mrf.mxu3 }
 0x66d   :  { %v993_v10 = vadd.f32 %v974_v58, %v3099_v51 }
 0x674   :  { %v976_v55 = vpop.f32.mrf.mxu3 }
 0x675   :  { %v994_v7 = vadd.f32 %v976_v55, %v734_v42 }
 0x676   :  { %2288 = vmatmul.msk.bf16.vlgmr.msra.gmra.mxu1 %vm230_vm2, %v1203_v19  ;;  %v2646_v19 = vmov 64.0  }
 0x677   :  { %2588 = vrcp.f32 %v2646_v19  ;;  %v2294_v19 = vld [vmem:[%s3831_s2] sm:$0xf] }
 0x67d   :  { %v2589_v15 = vpop.eup %2588 }
 0x67e   :  { %v1289_v27 = vmul.f32 64.0, %v2589_v15  ;;  %vm1293_vm4 = vweird.f32 %v2589_v15 }
 0x686   :  { %2289 = vmatmul.msk.bf16.gmra.mxu1 %vm230_vm2, %v1204_v14  ;;  %v1290_v14 = vsub.f32 1.0, %v1289_v27  ;;  %v2428_v27 = vld [vmem:[%s3831_s2 + $0x4] sm:$0xf] }
 0x688   :  { %v1291_v38 = vmul.f32 %v2589_v15, %v1290_v14 }
 0x68a   :  { %v1292_v31 = vadd.f32 %v2589_v15, %v1291_v38 }
 0x696   :  { %2290 = vmatmul.msk.bf16.gmra.mxu1 %vm230_vm2, %v1205_v43 }
 0x6a5   :  { %v979_v48 = vpop.f32.mrf.mxu3 }
 0x6a6   :  { %v995_v50 = vadd.f32 %v979_v48, %v3116_v11  ;;  %v2638_v48 = vld [vmem:[%s3832_s0 + $0x30] sm:$0xff] }
 0x6ad   :  { %v981_v45 = vpop.f32.mrf.mxu3 }
 0x6ae   :  { %v996_v44 = vadd.f32 %v981_v45, %v736_v49 }
 0x6b5   :  { %v984_v11 = vpop.f32.mrf.mxu3 }
 0x6b6   :  { %v997_v29 = vadd.f32 %v984_v11, %v3138_v8  ;;  %v2637_v8 = vld [vmem:[%s3832_s0 + $0x28] sm:$0xff] }
 0x6bd   :  { %v1199_v46 = vpop.f32.mrf.mxu0  ;;  %v986_v39 = vpop.f32.mrf.mxu3 }
 0x6be   :  { %v1206_v36 = vpack.c.bf16 %v1199_v46, %v1199_v46  ;;  %v998_v62 = vadd.f32 %v986_v39, %v738_v60  ;;  %v2312_v60 = vld [vmem:[%s3831_s2 + $0x78] sm:$0xf0] }
 0x6c0   :  { %2291 = vmatmul.msk.bf16.gmra.mxu1 %vm230_vm2, %v1206_v36  ;;  %v3352_v36 = vsel %vm1293_vm4, %v2589_v15, %v1292_v31  ;;  %v2429_v15 = vld [vmem:[%s3831_s2 + $0x14] sm:$0xf0]  ;;  %v2296_v31 = vld [vmem:[%s3831_s2 + $0x18] sm:$0xf0] }
 0x6c1   :  { %v2295_v38 = vor.u32 %v2429_v15, %v2294_v19 }
 0x6c5   :  { %v1201_v0 = vpop.f32.mrf.mxu0 }
 0x6e3   :  { %v939_v53 = vpop.f32.mrf.mxu1 }
 0x6e4   :  { %v946_v1 = vpack.c.bf16 %v939_v53, %v939_v53 }
 0x6e6   :  { %2275 = vmatmul.msk.bf16.gmra.mxu3 %vm230_vm2, %v946_v1 }
 0x6eb   :  { %v941_v3 = vpop.f32.mrf.mxu1 }
 0x6f3   :  { %v1234_v20 = vpop.f32.mrf.mxu1 }
 0x6f4   :  { %v1253_v63 = vadd.f32 %v1234_v20, %v993_v10 }
 0x6f6   :  { %v3318_v5 = vadd.f32 %v2632_v56, %v1253_v63 }
 0x6f8   :  { %v1267_v33 = vsel %vm121_vm0, %v3318_v5, 0.0 }
 0x6f9   :  { %1268 = vadd.xlane.f32.xlu2 %v1267_v33 }
 0x6fb   :  { %v1236_v51 = vpop.f32.mrf.mxu1 }
 0x6fc   :  { %v1254_v9 = vadd.f32 %v1236_v51, %v994_v7 }
 0x6fe   :  { %v1261_v13 = vadd.f32 %v2633_v16, %v1254_v9 }
 0x700   :  { %v1270_v35 = vsel %vm121_vm0, %v1261_v13, 0.0 }
 0x701   :  { %1271 = vadd.xlane.f32.xlu1 %v1270_v35 }
 0x703   :  { %v1239_v4 = vpop.f32.mrf.mxu1 }
 0x704   :  { %v1255_v25 = vadd.f32 %v1239_v4, %v995_v50 }
 0x706   :  { %v1262_v2 = vadd.f32 %v2634_v34, %v1255_v25 }
 0x708   :  { %v1273_v57 = vsel %vm121_vm0, %v1262_v2, 0.0 }
 0x709   :  { %1274 = vadd.xlane.f32.xlu2 %v1273_v57 }
 0x70b   :  { %v1241_v23 = vpop.f32.mrf.mxu1 }
 0x70c   :  { %v1256_v61 = vadd.f32 %v1241_v23, %v996_v44 }
 0x70e   :  { %v1263_v17 = vadd.f32 %v2635_v26, %v1256_v61  ;;  %v2318_v26 = vld [vmem:[%s3831_s2 + $0x90] sm:$0xf] }
 0x710   :  { %v1276_v6 = vsel %vm121_vm0, %v1263_v17, 0.0 }
 0x711   :  { %1277 = vadd.xlane.f32.xlu0 %v1276_v6  ;;  %v2434_v6 = vld [vmem:[%s3831_s2 + $0x94] sm:$0xf] }
 0x713   :  { %v1244_v37 = vpop.f32.mrf.mxu1 }
 0x714   :  { %v1257_v54 = vadd.f32 %v1244_v37, %v997_v29  ;;  %v2320_v37 = vld [vmem:[%s3831_s2 + $0xa8] sm:$0xf0] }
 0x716   :  { %v1264_v22 = vadd.f32 %v2636_v41, %v1257_v54  ;;  %v2323_v54 = vor.u32 %v2434_v6, %v2320_v37  ;;  %v2433_v41 = vld [vmem:[%s3831_s2 + $0x74] sm:$0xf0] }
 0x717   :  { %v2311_v39 = vor.u32 %v2433_v41, %v2310_v18 }
 0x718   :  { %v1279_v21 = vsel %vm121_vm0, %v1264_v22, 0.0  ;;  %1535 = vmatpush.bf16.msra.mxu2 %v2323_v54 }
 0x719   :  { %1280 = vadd.xlane.f32.xlu1 %v1279_v21 }
 0x71b   :  { %v1246_v12 = vpop.f32.mrf.mxu1 }
 0x71c   :  { %v1258_v32 = vadd.f32 %v1246_v12, %v998_v62  ;;  %v2302_v62 = vld [vmem:[%s3831_s2 + $0x30] sm:$0xf]  ;;  %v2431_v12 = vld [vmem:[%s3831_s2 + $0x44] sm:$0xf0] }
 0x71e   :  { %v1265_v28 = vadd.f32 %v2637_v8, %v1258_v32  ;;  %v2430_v32 = vld [vmem:[%s3831_s2 + $0x34] sm:$0xf]  ;;  %v2303_v8 = vor.u32 %v2431_v12, %v2302_v62 }
 0x720   :  { %v1282_v40 = vsel %vm121_vm0, %v1265_v28, 0.0 }
 0x721   :  { %1283 = vadd.xlane.f32.xlu2 %v1282_v40 }
 0x73d   :  { %v1249_v52 = vpop.f32.mrf.mxu1 }
 0x745   :  { %v1251_v59 = vpop.f32.mrf.mxu1 }
 0x769   :  { %v989_v43 = vpop.f32.mrf.mxu3 }
 0x76a   :  { %v999_v46 = vadd.f32 %v989_v43, %v3153_v24  ;;  %v2299_v43 = vor.u32 %v2428_v27, %v2296_v31 }
 0x76c   :  { %v1259_v0 = vadd.f32 %v1249_v52, %v999_v46  ;;  %v1269_v53 = vpop.xlane.xlu2 %1268 }
 0x76d   :  { %v1295_v1 = vmul.f32 %v3352_v36, %v1269_v53 }
 0x76e   :  { %v3373_v7 = vadd.f32 %v2638_v48, %v1259_v0 }
 0x76f   :  { %v3356_v58 = vsub.f32 %v3318_v5, %v1295_v1 }
 0x770   :  { %v1285_v16 = vsel %vm121_vm0, %v3373_v7, 0.0 }
 0x771   :  { %v991_v3 = vpop.f32.mrf.mxu3  ;;  %v1309_v55 = vmul.f32 %v3356_v58, %v3356_v58 }
 0x773   :  { %v1316_v10 = vsel %vm121_vm0, %v1309_v55, 0.0 }
 0x774   :  { %1317 = vadd.xlane.f32.xlu0 %v1316_v10  ;;  %v1272_v20 = vpop.xlane.xlu1 %1271 }
 0x775   :  { %v1296_v63 = vmul.f32 %v3352_v36, %v1272_v20 }
 0x777   :  { %v3362_v24 = vsub.f32 %v1261_v13, %v1296_v63 }
 0x779   :  { %v1310_v47 = vmul.f32 %v3362_v24, %v3362_v24 }
 0x77b   :  { %v1319_v56 = vsel %vm121_vm0, %v1310_v47, 0.0 }
 0x77c   :  { %v1275_v42 = vpop.xlane.xlu2 %1274  ;;  %1320 = vadd.xlane.f32.xlu1 %v1319_v56 }
 0x77d   :  { %v1297_v5 = vmul.f32 %v3352_v36, %v1275_v42 }
 0x77f   :  { %v3368_v33 = vsub.f32 %v1262_v2, %v1297_v5 }
 0x781   :  { %v1311_v51 = vmul.f32 %v3368_v33, %v3368_v33 }
 0x783   :  { %v1322_v9 = vsel %vm121_vm0, %v1311_v51, 0.0 }
 0x784   :  { %v1278_v13 = vpop.xlane.xlu0 %1277  ;;  %1323 = vadd.xlane.f32.xlu2 %v1322_v9  ;;  %1286 = vadd.xlane.f32.xlu1 %v1285_v16 }
 0x785   :  { %v1298_v35 = vmul.f32 %v3352_v36, %v1278_v13 }
 0x787   :  { %v3381_v50 = vsub.f32 %v1263_v17, %v1298_v35  ;;  %v2435_v17 = vld [vmem:[%s3831_s2 + $0xa4] sm:$0xf0] }
 0x788   :  { %v2319_v29 = vor.u32 %v2435_v17, %v2318_v26 }
 0x789   :  { %v1312_v45 = vmul.f32 %v3381_v50, %v3381_v50 }
 0x78a   :  { %1507 = vmatpush.bf16.msrb.mxu3 %v2319_v29 }
 0x78b   :  { %v1325_v4 = vsel %vm121_vm0, %v1312_v45, 0.0 }
 0x78c   :  { %1326 = vadd.xlane.f32.xlu0 %v1325_v4  ;;  %v1281_v25 = vpop.xlane.xlu1 %1280 }
 0x78d   :  { %v1299_v30 = vmul.f32 %v3352_v36, %v1281_v25 }
 0x78e   :  { %1508 = vmatpush.bf16.msrb.mxu3 %v2311_v39 }
 0x78f   :  { %v3387_v34 = vsub.f32 %v1264_v22, %v1299_v30  ;;  %v2432_v22 = vld [vmem:[%s3831_s2 + $0x64] sm:$0xf] }
 0x790   :  { %v2315_v21 = vor.u32 %v2432_v22, %v2312_v60 }
 0x791   :  { %v1313_v2 = vmul.f32 %v3387_v34, %v3387_v34 }
 0x792   :  { %1536 = vmatpush.bf16.msra.mxu2 %v2315_v21  ;;  %1509 = vmatpush.bf16.msrb.mxu3 %v2303_v8 }
 0x793   :  { %v1328_v49 = vsel %vm121_vm0, %v1313_v2, 0.0 }
 0x794   :  { %v1284_v57 = vpop.xlane.xlu2 %1283  ;;  %1329 = vadd.xlane.f32.xlu2 %v1328_v49 }
 0x795   :  { %v1300_v44 = vmul.f32 %v3352_v36, %v1284_v57 }
 0x796   :  { %1510 = vmatpush.bf16.msrb.mxu3 %v2295_v38 }
 0x797   :  { %v3393_v23 = vsub.f32 %v1265_v28, %v1300_v44  ;;  %v2304_v28 = vld [vmem:[%s3831_s2 + $0x48] sm:$0xf0] }
 0x798   :  { %v2307_v52 = vor.u32 %v2430_v32, %v2304_v28 }
 0x799   :  { %v1314_v61 = vmul.f32 %v3393_v23, %v3393_v23 }
 0x79a   :  { %1537 = vmatpush.bf16.msra.mxu2 %v2307_v52 }
 0x79b   :  { %v1331_v11 = vsel %vm121_vm0, %v1314_v61, 0.0  ;;  %v3461_v61 = vld [vmem:[%s3833_s4 + $0x5] ss:$0 sm:$0xff] }
 0x79c   :  { %1332 = vadd.xlane.f32.xlu0 %v1331_v11 }
 0x79e   :  { %1538 = vmatpush.bf16.msra.mxu2 %v2299_v43 }
 0x7e7   :  { %v1318_v40 = vpop.xlane.xlu0 %1317 }
 0x7e8   :  { %v1337_v59 = vmul.f32 %v1318_v40, %v3352_v36 }
 0x7ea   :  { %v1344_v14 = vadd.f32 1e-05, %v1337_v59 }
 0x7ec   :  { %2590 = vrsqrt.f32 %v1344_v14  ;;  %vm1357_vm6 = vweird.f32 %v1344_v14 }
 0x7ef   :  { %v1321_v46 = vpop.xlane.xlu1 %1320 }
 0x7f0   :  { %v1338_v0 = vmul.f32 %v1321_v46, %v3352_v36 }
 0x7f2   :  { %v2591_v53 = vpop.eup %2590  ;;  %v1345_v1 = vadd.f32 1e-05, %v1338_v0 }
 0x7f3   :  { %v1352_v3 = vmul.f32 %v2591_v53, %v1344_v14  ;;  %vm1358_vm5 = vweird.f32 %v2591_v53 }
 0x7f4   :  { %2592 = vrsqrt.f32 %v1345_v1  ;;  %vm1359_vm7 = vmor %vm1357_vm6, %vm1358_vm5  ;;  %vm1367_vm9 = vweird.f32 %v1345_v1 }
 0x7f5   :  { %v1353_v55 = vmul.f32 %v2591_v53, %v1352_v3 }
 0x7f7   :  { %v1354_v10 = vmul.f32 0.5, %v1353_v55  ;;  %v1324_v20 = vpop.xlane.xlu2 %1323  ;;  %v1287_v63 = vpop.xlane.xlu1 %1286 }
 0x7f8   :  { %v1339_v47 = vmul.f32 %v1324_v20, %v3352_v36  ;;  %v1301_v56 = vmul.f32 %v3352_v36, %v1287_v63 }
 0x7f9   :  { %v1355_v42 = vsub.f32 1.5, %v1354_v10 }
 0x7fa   :  { %v2593_v5 = vpop.eup %2592  ;;  %v1346_v48 = vadd.f32 1e-05, %v1339_v47  ;;  %v3451_v51 = vsub.f32 %v3373_v7, %v1301_v56 }
 0x7fb   :  { %v1356_v9 = vmul.f32 %v2591_v53, %v1355_v42  ;;  %v1362_v16 = vmul.f32 %v2593_v5, %v1345_v1  ;;  %vm1368_vm8 = vweird.f32 %v2593_v5 }
 0x7fc   :  { %2594 = vrsqrt.f32 %v1346_v48  ;;  %v1315_v13 = vmul.f32 %v3451_v51, %v3451_v51  ;;  %vm1369_vm10 = vmor %vm1367_vm9, %vm1368_vm8  ;;  %vm1377_vm12 = vweird.f32 %v1346_v48 }
 0x7fd   :  { %v1363_v35 = vmul.f32 %v2593_v5, %v1362_v16  ;;  %v1360_v4 = vsel %vm1359_vm7, %v2591_v53, %v1356_v9 }
 0x7fe   :  { %v1334_v45 = vsel %vm121_vm0, %v1315_v13, 0.0  ;;  %v1421_v57 = vmul.f32 %v1360_v4, %v3356_v58  ;;  %v3468_v58 = vld [vmem:[%s3833_s4 + $0x6] ss:$0 sm:$0xff] }
 0x7ff   :  { %v1364_v25 = vmul.f32 0.5, %v1363_v35  ;;  %v1327_v30 = vpop.xlane.xlu0 %1326  ;;  %1335 = vadd.xlane.f32.xlu1 %v1334_v45 }
 0x800   :  { %v1340_v2 = vmul.f32 %v1327_v30, %v3352_v36  ;;  %v1428_v29 = vmul.f32 %v1421_v57, %v3461_v61  ;;  %v2454_v57 = vld [vmem:[%s3835_s3 + $0x70] sm:$0xff] }
 0x801   :  { %v1365_v7 = vsub.f32 1.5, %v1364_v25 }
 0x802   :  { %v2595_v49 = vpop.eup %2594  ;;  %v1347_v44 = vadd.f32 1e-05, %v1340_v2  ;;  %v3473_v21 = vadd.f32 %v1428_v29, %v3468_v58  ;;  %v2451_v29 = vld [vmem:[%s3835_s3 + $0x58] sm:$0xff] }
 0x803   :  { %v1366_v11 = vmul.f32 %v2593_v5, %v1365_v7  ;;  %v1372_v26 = vmul.f32 %v2595_v49, %v1346_v48  ;;  %vm1378_vm11 = vweird.f32 %v2595_v49 }
 0x804   :  { %2596 = vrsqrt.f32 %v1347_v44  ;;  %vm1379_vm13 = vmor %vm1377_vm12, %vm1378_vm11  ;;  %vm1387_vm15 = vweird.f32 %v1347_v44 }
 0x805   :  { %v1370_v17 = vsel %vm1369_vm10, %v2593_v5, %v1366_v11  ;;  %v1373_v6 = vmul.f32 %v2595_v49, %v1372_v26  ;;  %v2453_v11 = vld [vmem:[%s3835_s3 + $0x68] sm:$0xff]  ;;  %v2444_v26 = vld [vmem:[%s3835_s3 + $0x20] sm:$0xff] }
 0x806   :  { %v1422_v37 = vmul.f32 %v1370_v17, %v3362_v24  ;;  %v2452_v17 = vld [vmem:[%s3835_s3 + $0x60] sm:$0xff] }
 0x807   :  { %v1374_v54 = vmul.f32 0.5, %v1373_v6  ;;  %v1330_v18 = vpop.xlane.xlu2 %1329  ;;  %v2443_v6 = vld [vmem:[%s3835_s3 + $0x18] sm:$0xff] }
 0x808   :  { %v1429_v41 = vmul.f32 %v1422_v37, %v3461_v61  ;;  %v1341_v22 = vmul.f32 %v1330_v18, %v3352_v36  ;;  %v2442_v18 = vld [vmem:[%s3835_s3 + $0x10] sm:$0xff] }
 0x809   :  { %v1375_v39 = vsub.f32 1.5, %v1374_v54 }
 0x80a   :  { %v2597_v60 = vpop.eup %2596  ;;  %v3476_v62 = vadd.f32 %v1429_v41, %v3468_v58  ;;  %v1348_v24 = vadd.f32 1e-05, %v1341_v22  ;;  %v2450_v41 = vld [vmem:[%s3835_s3 + $0x50] sm:$0xff] }
 0x80b   :  { %v1376_v12 = vmul.f32 %v2595_v49, %v1375_v39  ;;  %v1382_v32 = vmul.f32 %v2597_v60, %v1347_v44  ;;  %vm1388_vm14 = vweird.f32 %v2597_v60  ;;  %v2445_v44 = vld [vmem:[%s3835_s3 + $0x28] sm:$0xff] }
 0x80c   :  { %2598 = vrsqrt.f32 %v1348_v24  ;;  %v1442_v8 = vpack.c.bf16 %v3476_v62, %v3473_v21  ;;  %vm1389_vm1 = vmor %vm1387_vm15, %vm1388_vm14  ;;  %vm1397_vm3 = vweird.f32 %v1348_v24  ;;  %v2441_v39 = vld [vmem:[%s3835_s3 + $0x8] sm:$0xff] }
 0x80d   :  { %v1383_v28 = vmul.f32 %v2597_v60, %v1382_v32  ;;  %v1380_v40 = vsel %vm1379_vm13, %v2595_v49, %v1376_v12  ;;  %v2446_v49 = vld [vmem:[%s3835_s3 + $0x30] sm:$0xff]  ;;  %v2448_v12 = vld [vmem:[%s3835_s3 + $0x40] sm:$0xff] }
 0x80e   :  { %2324 = vmatmul.msk.bf16.vlgmr.msrb.gmra.mxu3 %vm121_vm0, %v1442_v8  ;;  %2328 = vmatmul.msk.bf16.vlgmr.msra.gmra.mxu2 %vm121_vm0, %v1442_v8  ;;  %v1423_v14 = vmul.f32 %v1380_v40, %v3368_v33 }
 0x80f   :  { %v1384_v52 = vmul.f32 0.5, %v1383_v28  ;;  %v1333_v59 = vpop.xlane.xlu0 %1332 }
 0x810   :  { %v1342_v19 = vmul.f32 %v1333_v59, %v3352_v36  ;;  %v1430_v1 = vmul.f32 %v1423_v14, %v3461_v61 }
 0x811   :  { %v1385_v15 = vsub.f32 1.5, %v1384_v52 }
 0x812   :  { %v2599_v27 = vpop.eup %2598  ;;  %v1349_v38 = vadd.f32 1e-05, %v1342_v19  ;;  %v3488_v63 = vadd.f32 %v1430_v1, %v3468_v58 }
 0x813   :  { %v1386_v31 = vmul.f32 %v2597_v60, %v1385_v15  ;;  %v1392_v43 = vmul.f32 %v2599_v27, %v1348_v24  ;;  %vm1398_vm2 = vweird.f32 %v2599_v27  ;;  %v2440_v24 = vld [vmem:[%s3835_s3] sm:$0xff] }
 0x814   :  { %2600 = vrsqrt.f32 %v1349_v38  ;;  %vm1399_vm4 = vmor %vm1397_vm3, %vm1398_vm2  ;;  %vm1407_vm6 = vweird.f32 %v1349_v38 }
 0x815   :  { %v1390_v46 = vsel %vm1389_vm1, %v2597_v60, %v1386_v31  ;;  %v1393_v0 = vmul.f32 %v2599_v27, %v1392_v43  ;;  %v2449_v60 = vld [vmem:[%s3835_s3 + $0x48] sm:$0xff] }
 0x816   :  { %v1424_v53 = vmul.f32 %v1390_v46, %v3381_v50  ;;  %v2187_v31 = vld [vmem:[%s3833_s4 + $0x1] ss:$8 sm:$0x3] }
 0x817   :  { %v1394_v3 = vmul.f32 0.5, %v1393_v0  ;;  %v1447_v0 = vperm.slane %v2187_v31, 0 }
 0x818   :  { %v1431_v55 = vmul.f32 %v1424_v53, %v3461_v61 }
 0x819   :  { %v1395_v10 = vsub.f32 1.5, %v1394_v3 }
 0x81a   :  { %v2601_v20 = vpop.eup %2600  ;;  %v3491_v33 = vadd.f32 %v1431_v55, %v3468_v58 }
 0x81b   :  { %v1396_v47 = vmul.f32 %v2599_v27, %v1395_v10  ;;  %v1402_v56 = vmul.f32 %v2601_v20, %v1349_v38  ;;  %vm1408_vm5 = vweird.f32 %v2601_v20 }
 0x81c   :  { %v1443_v42 = vpack.c.bf16 %v3491_v33, %v3488_v63  ;;  %vm1409_vm7 = vmor %vm1407_vm6, %vm1408_vm5 }
 0x81d   :  { %v1403_v50 = vmul.f32 %v2601_v20, %v1402_v56  ;;  %v1400_v5 = vsel %vm1399_vm4, %v2599_v27, %v1396_v47 }
 0x81e   :  { %2325 = vmatmul.msk.bf16.gmra.mxu3 %vm121_vm0, %v1443_v42  ;;  %2329 = vmatmul.msk.bf16.gmra.mxu2 %vm121_vm0, %v1443_v42  ;;  %v1425_v16 = vmul.f32 %v1400_v5, %v3387_v34  ;;  %v2447_v34 = vld [vmem:[%s3835_s3 + $0x38] sm:$0xff] }
 0x81f   :  { %v1404_v48 = vmul.f32 0.5, %v1403_v50  ;;  %1709 = vmatpush.bf16.msrb.mxu0 %v2447_v34 }
 0x820   :  { %v1432_v4 = vmul.f32 %v1425_v16, %v3461_v61 }
 0x821   :  { %v1405_v9 = vsub.f32 1.5, %v1404_v48 }
 0x822   :  { %v3502_v30 = vadd.f32 %v1432_v4, %v3468_v58 }
 0x823   :  { %v1406_v13 = vmul.f32 %v2601_v20, %v1405_v9  ;;  %1710 = vmatpush.bf16.msrb.mxu0 %v2446_v49 }
 0x825   :  { %v1410_v35 = vsel %vm1409_vm7, %v2601_v20, %v1406_v13 }
 0x826   :  { %v1426_v45 = vmul.f32 %v1410_v35, %v3393_v23  ;;  %v2455_v23 = vld [vmem:[%s3835_s3 + $0x78] sm:$0xff] }
 0x827   :  { %1737 = vmatpush.bf16.msrb.mxu1 %v2455_v23  ;;  %1711 = vmatpush.bf16.msrb.mxu0 %v2445_v44 }
 0x828   :  { %v1433_v25 = vmul.f32 %v1426_v45, %v3461_v61 }
 0x82a   :  { %v3505_v2 = vadd.f32 %v1433_v25, %v3468_v58 }
 0x82b   :  { %1738 = vmatpush.bf16.msrb.mxu1 %v2454_v57  ;;  %1712 = vmatpush.bf16.msrb.mxu0 %v2444_v26 }
 0x82c   :  { %v1444_v7 = vpack.c.bf16 %v3505_v2, %v3502_v30 }
 0x82e   :  { %2326 = vmatmul.msk.bf16.gmra.mxu3 %vm121_vm0, %v1444_v7  ;;  %2330 = vmatmul.msk.bf16.gmra.mxu2 %vm121_vm0, %v1444_v7 }
 0x82f   :  { %1739 = vmatpush.bf16.msrb.mxu1 %v2453_v11  ;;  %1713 = vmatpush.bf16.msrb.mxu0 %v2443_v6 }
 0x833   :  { %1740 = vmatpush.bf16.msrb.mxu1 %v2452_v17  ;;  %1714 = vmatpush.bf16.msrb.mxu0 %v2442_v18 }
 0x837   :  { %1741 = vmatpush.bf16.msrb.mxu1 %v2451_v29  ;;  %1715 = vmatpush.bf16.msrb.mxu0 %v2441_v39 }
 0x83b   :  { %1742 = vmatpush.bf16.msrb.mxu1 %v2450_v41  ;;  %1716 = vmatpush.bf16.msrb.mxu0 %v2440_v24 }
 0x83f   :  { %1743 = vmatpush.bf16.msrb.mxu1 %v2449_v60 }
 0x843   :  { %1744 = vmatpush.bf16.msrb.mxu1 %v2448_v12 }
 0x872   :  { %v1336_v37 = vpop.xlane.xlu1 %1335 }
 0x873   :  { %v1343_v54 = vmul.f32 %v1336_v37, %v3352_v36 }
 0x875   :  { %v1350_v22 = vadd.f32 1e-05, %v1343_v54 }
 0x877   :  { %2602 = vrsqrt.f32 %v1350_v22  ;;  %vm1417_vm9 = vweird.f32 %v1350_v22 }
 0x87d   :  { %v2603_v32 = vpop.eup %2602 }
 0x87e   :  { %v1412_v8 = vmul.f32 %v2603_v32, %v1350_v22  ;;  %vm1418_vm8 = vweird.f32 %v2603_v32 }
 0x87f   :  { %vm1419_vm10 = vmor %vm1417_vm9, %vm1418_vm8 }
 0x880   :  { %v1413_v28 = vmul.f32 %v2603_v32, %v1412_v8 }
 0x882   :  { %v1414_v40 = vmul.f32 0.5, %v1413_v28 }
 0x884   :  { %v1415_v52 = vsub.f32 1.5, %v1414_v40 }
 0x886   :  { %v1416_v59 = vmul.f32 %v2603_v32, %v1415_v52 }
 0x888   :  { %v1420_v19 = vsel %vm1419_vm10, %v2603_v32, %v1416_v59 }
 0x889   :  { %v1427_v15 = vmul.f32 %v1420_v19, %v3451_v51  ;;  %v1448_v51 = vperm.slane %v2187_v31, 1 }
 0x88b   :  { %v1434_v27 = vmul.f32 %v1427_v15, %v3461_v61  ;;  %v32_v15 = vld [vmem:[%s3833_s4 + $0x3] ss:$0 sm:$0xff] }
 0x88d   :  { %v3563_v14 = vadd.f32 %v1434_v27, %v3468_v58 }
 0x88f   :  { %v1445_v38 = vpack.c.bf16 %v3563_v14, %v3563_v14 }
 0x891   :  { %v1512_v43 = vpop.f32.mrf.mxu3  ;;  %2327 = vmatmul.msk.bf16.gmra.mxu3 %vm121_vm0, %v1445_v38  ;;  %v1540_v46 = vpop.f32.mrf.mxu2  ;;  %2331 = vmatmul.msk.bf16.gmra.mxu2 %vm121_vm0, %v1445_v38 }
 0x892   :  { %v1513_v53 = vadd.f32 %v1512_v43, %v1447_v0  ;;  %v1541_v61 = vadd.f32 %v1540_v46, %v1448_v51 }
 0x894   :  { %v1559_v10 = vmax.f32 %v1513_v53, 0.0  ;;  %v1560_v20 = vmax.f32 %v1541_v61, 0.0 }
 0x899   :  { %v1514_v1 = vpop.f32.mrf.mxu3  ;;  %v1542_v58 = vpop.f32.mrf.mxu2 }
 0x89a   :  { %v1515_v3 = vadd.f32 %v1514_v1, %v1447_v0  ;;  %v1543_v55 = vadd.f32 %v1542_v58, %v1448_v51 }
 0x89c   :  { %v1561_v47 = vmax.f32 %v1515_v3, 0.0  ;;  %v1562_v56 = vmax.f32 %v1543_v55, 0.0 }
 0x89e   :  { %v1573_v42 = vpack.c.bf16 %v1561_v47, %v1559_v10  ;;  %v1574_v50 = vpack.c.bf16 %v1562_v56, %v1560_v20 }
 0x8a0   :  { %1717 = vmatmul.bf16.vlgmr.msrb.gmra.mxu0 %v1573_v42  ;;  %1745 = vmatmul.bf16.vlgmr.msrb.gmra.mxu1 %v1574_v50 }
 0x8a1   :  { %v1517_v5 = vpop.f32.mrf.mxu3  ;;  %v1545_v48 = vpop.f32.mrf.mxu2 }
 0x8a2   :  { %v1518_v9 = vadd.f32 %v1517_v5, %v1447_v0  ;;  %v1546_v16 = vadd.f32 %v1545_v48, %v1448_v51 }
 0x8a4   :  { %v1563_v25 = vmax.f32 %v1518_v9, 0.0  ;;  %v1564_v7 = vmax.f32 %v1546_v16, 0.0 }
 0x8a9   :  { %v1519_v13 = vpop.f32.mrf.mxu3  ;;  %v1547_v35 = vpop.f32.mrf.mxu2 }
 0x8aa   :  { %v1520_v45 = vadd.f32 %v1519_v13, %v1447_v0  ;;  %v1548_v4 = vadd.f32 %v1547_v35, %v1448_v51 }
 0x8ac   :  { %v1565_v34 = vmax.f32 %v1520_v45, 0.0  ;;  %v1566_v23 = vmax.f32 %v1548_v4, 0.0 }
 0x8ae   :  { %v1575_v49 = vpack.c.bf16 %v1565_v34, %v1563_v25  ;;  %v1576_v57 = vpack.c.bf16 %v1566_v23, %v1564_v7 }
 0x8b0   :  { %1722 = vmatmul.bf16.gmra.mxu0 %v1575_v49  ;;  %1750 = vmatmul.bf16.gmra.mxu1 %v1576_v57 }
 0x8b1   :  { %v1522_v44 = vpop.f32.mrf.mxu3  ;;  %v1550_v11 = vpop.f32.mrf.mxu2 }
 0x8b2   :  { %v1523_v26 = vadd.f32 %v1522_v44, %v1447_v0  ;;  %v1551_v17 = vadd.f32 %v1550_v11, %v1448_v51 }
 0x8b4   :  { %v1567_v18 = vmax.f32 %v1523_v26, 0.0  ;;  %v1568_v41 = vmax.f32 %v1551_v17, 0.0 }
 0x8b9   :  { %v1524_v6 = vpop.f32.mrf.mxu3  ;;  %v1552_v29 = vpop.f32.mrf.mxu2 }
 0x8ba   :  { %v1525_v37 = vadd.f32 %v1524_v6, %v1447_v0  ;;  %v1553_v54 = vadd.f32 %v1552_v29, %v1448_v51 }
 0x8bc   :  { %v1569_v22 = vmax.f32 %v1525_v37, 0.0  ;;  %v1570_v39 = vmax.f32 %v1553_v54, 0.0 }
 0x8be   :  { %v1577_v60 = vpack.c.bf16 %v1569_v22, %v1567_v18  ;;  %v1578_v24 = vpack.c.bf16 %v1570_v39, %v1568_v41 }
 0x8c0   :  { %1727 = vmatmul.bf16.gmra.mxu0 %v1577_v60  ;;  %1755 = vmatmul.bf16.gmra.mxu1 %v1578_v24 }
 0x914   :  { %v1527_v12 = vpop.f32.mrf.mxu3  ;;  %v1555_v32 = vpop.f32.mrf.mxu2 }
 0x915   :  { %v1528_v8 = vadd.f32 %v1527_v12, %v1447_v0  ;;  %v1556_v28 = vadd.f32 %v1555_v32, %v1448_v51 }
 0x917   :  { %v1571_v40 = vmax.f32 %v1528_v8, 0.0  ;;  %v1572_v52 = vmax.f32 %v1556_v28, 0.0 }
 0x919   :  { %v1579_v59 = vpack.c.bf16 %v1571_v40, %v1571_v40  ;;  %v1580_v19 = vpack.c.bf16 %v1572_v52, %v1572_v52 }
 0x91b   :  { %1732 = vmatmul.bf16.gmra.mxu0 %v1579_v59  ;;  %1760 = vmatmul.bf16.gmra.mxu1 %v1580_v19 }
 0x91c   :  { %v1529_v27 = vpop.f32.mrf.mxu3  ;;  %v1557_v38 = vpop.f32.mrf.mxu2 }
 0x91d   :  { %v1718_v31 = vpop.f32.mrf.mxu0  ;;  %v1746_v43 = vpop.f32.mrf.mxu1 }
 0x91e   :  { %v1719_v46 = vadd.f32 %v1718_v31, %v32_v15 }
 0x920   :  { %v1747_v53 = vadd.f32 %v1746_v43, %v1719_v46 }
 0x922   :  { %v1765_v61 = vadd.f32 %v1747_v53, %v3473_v21 }
 0x924   :  { %v1772_v0 = vsel %vm121_vm0, %v1765_v61, 0.0 }
 0x925   :  { %v1720_v51 = vpop.f32.mrf.mxu0  ;;  %v1748_v1 = vpop.f32.mrf.mxu1  ;;  %1773 = vadd.xlane.f32.xlu2 %v1772_v0 }
 0x926   :  { %v1721_v58 = vadd.f32 %v1720_v51, %v32_v15 }
 0x928   :  { %v1749_v3 = vadd.f32 %v1748_v1, %v1721_v58 }
 0x92a   :  { %v1766_v55 = vadd.f32 %v1749_v3, %v3476_v62 }
 0x92c   :  { %v1775_v10 = vsel %vm121_vm0, %v1766_v55, 0.0 }
 0x92d   :  { %v1723_v20 = vpop.f32.mrf.mxu0  ;;  %v1751_v47 = vpop.f32.mrf.mxu1  ;;  %1776 = vadd.xlane.f32.xlu0 %v1775_v10 }
 0x92e   :  { %v1724_v56 = vadd.f32 %v1723_v20, %v32_v15 }
 0x930   :  { %v1752_v42 = vadd.f32 %v1751_v47, %v1724_v56 }
 0x932   :  { %v1767_v50 = vadd.f32 %v1752_v42, %v3488_v63 }
 0x934   :  { %v1778_v21 = vsel %vm121_vm0, %v1767_v50, 0.0 }
 0x935   :  { %v1725_v5 = vpop.f32.mrf.mxu0  ;;  %v1753_v48 = vpop.f32.mrf.mxu1  ;;  %1779 = vadd.xlane.f32.xlu1 %v1778_v21 }
 0x936   :  { %v1726_v9 = vadd.f32 %v1725_v5, %v32_v15 }
 0x938   :  { %v1754_v16 = vadd.f32 %v1753_v48, %v1726_v9 }
 0x93a   :  { %v1768_v13 = vadd.f32 %v1754_v16, %v3491_v33 }
 0x93c   :  { %v1781_v62 = vsel %vm121_vm0, %v1768_v13, 0.0 }
 0x93d   :  { %v1728_v35 = vpop.f32.mrf.mxu0  ;;  %v1756_v45 = vpop.f32.mrf.mxu1  ;;  %1782 = vadd.xlane.f32.xlu2 %v1781_v62 }
 0x93e   :  { %v1729_v4 = vadd.f32 %v1728_v35, %v32_v15 }
 0x940   :  { %v1757_v25 = vadd.f32 %v1756_v45, %v1729_v4 }
 0x942   :  { %v1769_v7 = vadd.f32 %v1757_v25, %v3502_v30 }
 0x944   :  { %v1784_v63 = vsel %vm121_vm0, %v1769_v7, 0.0 }
 0x945   :  { %v1730_v34 = vpop.f32.mrf.mxu0  ;;  %1785 = vadd.xlane.f32.xlu0 %v1784_v63  ;;  %v1758_v49 = vpop.f32.mrf.mxu1 }
 0x946   :  { %v1731_v23 = vadd.f32 %v1730_v34, %v32_v15 }
 0x948   :  { %v1759_v57 = vadd.f32 %v1758_v49, %v1731_v23 }
 0x94a   :  { %v1770_v44 = vadd.f32 %v1759_v57, %v3505_v2 }
 0x94c   :  { %v1787_v33 = vsel %vm121_vm0, %v1770_v44, 0.0 }
 0x94d   :  { %1788 = vadd.xlane.f32.xlu1 %v1787_v33 }
 0x998   :  { %v1774_v11 = vpop.xlane.xlu2 %1773  ;;  %v1733_v26 = vpop.f32.mrf.mxu0 }
 0x999   :  { %v1793_v17 = vmul.f32 %v1774_v11, %v3352_v36  ;;  %v1734_v6 = vadd.f32 %v1733_v26, %v32_v15  ;;  %v1761_v29 = vpop.f32.mrf.mxu1 }
 0x99b   :  { %v3588_v37 = vsub.f32 %v1765_v61, %v1793_v17  ;;  %v1762_v30 = vadd.f32 %v1761_v29, %v1734_v6  ;;  %v3643_v6 = vld [vmem:[%s3833_s4 + $0x10] ss:$0 sm:$0xff] }
 0x99d   :  { %v1807_v54 = vmul.f32 %v3588_v37, %v3588_v37  ;;  %v1771_v18 = vadd.f32 %v1762_v30, %v3563_v14 }
 0x99f   :  { %v1814_v41 = vsel %vm121_vm0, %v1807_v54, 0.0  ;;  %v1790_v2 = vsel %vm121_vm0, %v1771_v18, 0.0 }
 0x9a0   :  { %v1777_v22 = vpop.xlane.xlu0 %1776  ;;  %1815 = vadd.xlane.f32.xlu2 %v1814_v41  ;;  %v1735_v39 = vpop.f32.mrf.mxu0  ;;  %1791 = vadd.xlane.f32.xlu1 %v1790_v2 }
 0x9a1   :  { %v1794_v60 = vmul.f32 %v1777_v22, %v3352_v36  ;;  %v1763_v24 = vpop.f32.mrf.mxu1 }
 0x9a3   :  { %v3596_v12 = vsub.f32 %v1766_v55, %v1794_v60 }
 0x9a5   :  { %v1808_v32 = vmul.f32 %v3596_v12, %v3596_v12 }
 0x9a7   :  { %v1817_v8 = vsel %vm121_vm0, %v1808_v32, 0.0 }
 0x9a8   :  { %1818 = vadd.xlane.f32.xlu0 %v1817_v8  ;;  %v1780_v14 = vpop.xlane.xlu1 %1779 }
 0x9a9   :  { %v1795_v28 = vmul.f32 %v1780_v14, %v3352_v36 }
 0x9ab   :  { %v3602_v40 = vsub.f32 %v1767_v50, %v1795_v28 }
 0x9ad   :  { %v1809_v52 = vmul.f32 %v3602_v40, %v3602_v40 }
 0x9af   :  { %v1820_v59 = vsel %vm121_vm0, %v1809_v52, 0.0 }
 0x9b0   :  { %v1783_v19 = vpop.xlane.xlu2 %1782  ;;  %1821 = vadd.xlane.f32.xlu2 %v1820_v59 }
 0x9b1   :  { %v1796_v15 = vmul.f32 %v1783_v19, %v3352_v36 }
 0x9b3   :  { %v3608_v27 = vsub.f32 %v1768_v13, %v1796_v15 }
 0x9b5   :  { %v1810_v38 = vmul.f32 %v3608_v27, %v3608_v27 }
 0x9b7   :  { %v1823_v31 = vsel %vm121_vm0, %v1810_v38, 0.0 }
 0x9b8   :  { %v1786_v43 = vpop.xlane.xlu0 %1785  ;;  %1824 = vadd.xlane.f32.xlu0 %v1823_v31 }
 0x9b9   :  { %v1797_v46 = vmul.f32 %v1786_v43, %v3352_v36 }
 0x9bb   :  { %v3614_v53 = vsub.f32 %v1769_v7, %v1797_v46 }
 0x9bd   :  { %v1811_v61 = vmul.f32 %v3614_v53, %v3614_v53 }
 0x9bf   :  { %v1826_v0 = vsel %vm121_vm0, %v1811_v61, 0.0 }
 0x9c0   :  { %1827 = vadd.xlane.f32.xlu1 %v1826_v0  ;;  %v1789_v51 = vpop.xlane.xlu1 %1788 }
 0x9c1   :  { %v1798_v1 = vmul.f32 %v1789_v51, %v3352_v36 }
 0x9c3   :  { %v3620_v58 = vsub.f32 %v1770_v44, %v1798_v1  ;;  %v3637_v44 = vld [vmem:[%s3833_s4 + $0x7] ss:$0 sm:$0xff] }
 0x9c5   :  { %v1812_v3 = vmul.f32 %v3620_v58, %v3620_v58 }
 0x9c7   :  { %v1829_v55 = vsel %vm121_vm0, %v1812_v3, 0.0 }
 0x9c8   :  { %1830 = vadd.xlane.f32.xlu2 %v1829_v55 }
 0xa13   :  { %v1816_v10 = vpop.xlane.xlu2 %1815  ;;  %v1792_v20 = vpop.xlane.xlu1 %1791 }
 0xa14   :  { %v1835_v47 = vmul.f32 %v1816_v10, %v3352_v36  ;;  %v1799_v56 = vmul.f32 %v1792_v20, %v3352_v36 }
 0xa16   :  { %v1842_v42 = vadd.f32 1e-05, %v1835_v47  ;;  %v3627_v50 = vsub.f32 %v1771_v18, %v1799_v56 }
 0xa18   :  { %2604 = vrsqrt.f32 %v1842_v42  ;;  %v1813_v21 = vmul.f32 %v3627_v50, %v3627_v50  ;;  %vm1855_vm12 = vweird.f32 %v1842_v42 }
 0xa1a   :  { %v1832_v5 = vsel %vm121_vm0, %v1813_v21, 0.0 }
 0xa1b   :  { %v1819_v48 = vpop.xlane.xlu0 %1818  ;;  %1833 = vadd.xlane.f32.xlu0 %v1832_v5 }
 0xa1c   :  { %v1836_v9 = vmul.f32 %v1819_v48, %v3352_v36 }
 0xa1e   :  { %v2605_v16 = vpop.eup %2604  ;;  %v1843_v13 = vadd.f32 1e-05, %v1836_v9 }
 0xa1f   :  { %v1850_v62 = vmul.f32 %v2605_v16, %v1842_v42  ;;  %vm1856_vm11 = vweird.f32 %v2605_v16 }
 0xa20   :  { %2606 = vrsqrt.f32 %v1843_v13  ;;  %vm1857_vm13 = vmor %vm1855_vm12, %vm1856_vm11  ;;  %vm1865_vm15 = vweird.f32 %v1843_v13 }
 0xa21   :  { %v1851_v35 = vmul.f32 %v2605_v16, %v1850_v62 }
 0xa23   :  { %v1852_v45 = vmul.f32 0.5, %v1851_v35  ;;  %v1822_v4 = vpop.xlane.xlu2 %1821 }
 0xa24   :  { %v1837_v25 = vmul.f32 %v1822_v4, %v3352_v36 }
 0xa25   :  { %v1853_v7 = vsub.f32 1.5, %v1852_v45 }
 0xa26   :  { %v2607_v63 = vpop.eup %2606  ;;  %v1844_v34 = vadd.f32 1e-05, %v1837_v25 }
 0xa27   :  { %v1854_v23 = vmul.f32 %v2605_v16, %v1853_v7  ;;  %v1860_v49 = vmul.f32 %v2607_v63, %v1843_v13  ;;  %vm1866_vm14 = vweird.f32 %v2607_v63 }
 0xa28   :  { %2608 = vrsqrt.f32 %v1844_v34  ;;  %vm1867_vm1 = vmor %vm1865_vm15, %vm1866_vm14  ;;  %vm1875_vm3 = vweird.f32 %v1844_v34 }
 0xa29   :  { %v1861_v57 = vmul.f32 %v2607_v63, %v1860_v49  ;;  %v1858_v33 = vsel %vm1857_vm13, %v2605_v16, %v1854_v23 }
 0xa2a   :  { %v1919_v11 = vmul.f32 %v1858_v33, %v3588_v37 }
 0xa2b   :  { %v1862_v26 = vmul.f32 0.5, %v1861_v57  ;;  %v1825_v17 = vpop.xlane.xlu0 %1824 }
 0xa2c   :  { %v1838_v29 = vmul.f32 %v1825_v17, %v3352_v36  ;;  %v1926_v30 = vmul.f32 %v1919_v11, %v3637_v44 }
 0xa2d   :  { %v1863_v54 = vsub.f32 1.5, %v1862_v26 }
 0xa2e   :  { %v2609_v18 = vpop.eup %2608  ;;  %v1845_v41 = vadd.f32 1e-05, %v1838_v29  ;;  %v3648_v2 = vadd.f32 %v1926_v30, %v3643_v6 }
 0xa2f   :  { %v1864_v22 = vmul.f32 %v2607_v63, %v1863_v54  ;;  %v1870_v37 = vmul.f32 %v2609_v18, %v1844_v34  ;;  %vm1876_vm2 = vweird.f32 %v2609_v18 }
 0xa30   :  { %2610 = vrsqrt.f32 %v1845_v41  ;;  %v1940_v39 = vsel %vm121_vm0, %v3648_v2, 0.0  ;;  %vm1877_vm4 = vmor %vm1875_vm3, %vm1876_vm2  ;;  %vm1885_vm6 = vweird.f32 %v1845_v41 }
 0xa31   :  { %v1871_v60 = vmul.f32 %v2609_v18, %v1870_v37  ;;  %1941 = vadd.xlane.f32.xlu1 %v1940_v39  ;;  %v1868_v24 = vsel %vm1867_vm1, %v2607_v63, %v1864_v22 }
 0xa32   :  { %v1920_v32 = vmul.f32 %v1868_v24, %v3596_v12 }
 0xa33   :  { %v1872_v8 = vmul.f32 0.5, %v1871_v60  ;;  %v1828_v14 = vpop.xlane.xlu1 %1827 }
 0xa34   :  { %v1839_v28 = vmul.f32 %v1828_v14, %v3352_v36  ;;  %v1927_v52 = vmul.f32 %v1920_v32, %v3637_v44 }
 0xa35   :  { %v1873_v59 = vsub.f32 1.5, %v1872_v8 }
 0xa36   :  { %v2611_v19 = vpop.eup %2610  ;;  %v1846_v15 = vadd.f32 1e-05, %v1839_v28  ;;  %v3656_v38 = vadd.f32 %v1927_v52, %v3643_v6 }
 0xa37   :  { %v1874_v31 = vmul.f32 %v2609_v18, %v1873_v59  ;;  %v1880_v43 = vmul.f32 %v2611_v19, %v1845_v41  ;;  %vm1886_vm5 = vweird.f32 %v2611_v19 }
 0xa38   :  { %2612 = vrsqrt.f32 %v1846_v15  ;;  %v1943_v12 = vsel %vm121_vm0, %v3656_v38, 0.0  ;;  %vm1887_vm7 = vmor %vm1885_vm6, %vm1886_vm5  ;;  %vm1895_vm9 = vweird.f32 %v1846_v15 }
 0xa39   :  { %v1881_v46 = vmul.f32 %v2611_v19, %v1880_v43  ;;  %1944 = vadd.xlane.f32.xlu2 %v1943_v12  ;;  %v1878_v61 = vsel %vm1877_vm4, %v2609_v18, %v1874_v31 }
 0xa3a   :  { %v1921_v0 = vmul.f32 %v1878_v61, %v3602_v40 }
 0xa3b   :  { %v1882_v51 = vmul.f32 0.5, %v1881_v46  ;;  %v1831_v1 = vpop.xlane.xlu2 %1830 }
 0xa3c   :  { %v1840_v3 = vmul.f32 %v1831_v1, %v3352_v36  ;;  %v1928_v55 = vmul.f32 %v1921_v0, %v3637_v44 }
 0xa3d   :  { %v1883_v10 = vsub.f32 1.5, %v1882_v51 }
 0xa3e   :  { %v2613_v20 = vpop.eup %2612  ;;  %v1847_v47 = vadd.f32 1e-05, %v1840_v3  ;;  %v3664_v56 = vadd.f32 %v1928_v55, %v3643_v6 }
 0xa3f   :  { %v1884_v42 = vmul.f32 %v2611_v19, %v1883_v10  ;;  %v1890_v21 = vmul.f32 %v2613_v20, %v1846_v15  ;;  %vm1896_vm8 = vweird.f32 %v2613_v20 }
 0xa40   :  { %2614 = vrsqrt.f32 %v1847_v47  ;;  %v1946_v40 = vsel %vm121_vm0, %v3664_v56, 0.0  ;;  %vm1897_vm10 = vmor %vm1895_vm9, %vm1896_vm8  ;;  %vm1905_vm12 = vweird.f32 %v1847_v47 }
 0xa41   :  { %v1891_v5 = vmul.f32 %v2613_v20, %v1890_v21  ;;  %1947 = vadd.xlane.f32.xlu0 %v1946_v40  ;;  %v1888_v48 = vsel %vm1887_vm7, %v2611_v19, %v1884_v42 }
 0xa42   :  { %v1922_v9 = vmul.f32 %v1888_v48, %v3608_v27 }
 0xa43   :  { %v1892_v16 = vmul.f32 0.5, %v1891_v5 }
 0xa44   :  { %v1929_v13 = vmul.f32 %v1922_v9, %v3637_v44 }
 0xa45   :  { %v1893_v62 = vsub.f32 1.5, %v1892_v16 }
 0xa46   :  { %v2615_v35 = vpop.eup %2614  ;;  %v3671_v45 = vadd.f32 %v1929_v13, %v3643_v6 }
 0xa47   :  { %v1894_v4 = vmul.f32 %v2613_v20, %v1893_v62  ;;  %v1900_v25 = vmul.f32 %v2615_v35, %v1847_v47  ;;  %vm1906_vm11 = vweird.f32 %v2615_v35 }
 0xa48   :  { %v1949_v7 = vsel %vm121_vm0, %v3671_v45, 0.0  ;;  %vm1907_vm13 = vmor %vm1905_vm12, %vm1906_vm11 }
 0xa49   :  { %v1901_v63 = vmul.f32 %v2615_v35, %v1900_v25  ;;  %1950 = vadd.xlane.f32.xlu1 %v1949_v7  ;;  %v1898_v34 = vsel %vm1897_vm10, %v2613_v20, %v1894_v4  ;;  %v2406_v25 = vld [vmem:[%s3831_s2 + $0x74] sm:$0xf]  ;;  %v2438_v7 = vld [vmem:[%s3831_s2 + $0x88] sm:$0xf0] }
 0xa4a   :  { %v1923_v27 = vmul.f32 %v1898_v34, %v3614_v53  ;;  %v2402_v34 = vld [vmem:[%s3831_s2 + $0x44] sm:$0xf] }
 0xa4b   :  { %v1902_v23 = vmul.f32 0.5, %v1901_v63  ;;  %v2407_v63 = vor.u32 %v2438_v7, %v2406_v25 }
 0xa4c   :  { %v1930_v49 = vmul.f32 %v1923_v27, %v3637_v44  ;;  %v2437_v27 = vld [vmem:[%s3831_s2 + $0x58] sm:$0xf0] }
 0xa4d   :  { %v1903_v57 = vsub.f32 1.5, %v1902_v23  ;;  %v2403_v23 = vor.u32 %v2437_v27, %v2402_v34 }
 0xa4e   :  { %v1937_v33 = vadd.f32 %v1930_v49, %v3643_v6 }
 0xa4f   :  { %v1904_v11 = vmul.f32 %v2615_v35, %v1903_v57 }
 0xa50   :  { %v1952_v26 = vsel %vm121_vm0, %v1937_v33, 0.0 }
 0xa51   :  { %1953 = vadd.xlane.f32.xlu2 %v1952_v26  ;;  %v1908_v17 = vsel %vm1907_vm13, %v2615_v35, %v1904_v11  ;;  %v2410_v35 = vld [vmem:[%s3831_s2 + $0xa4] sm:$0xf]  ;;  %v2398_v26 = vld [vmem:[%s3831_s2 + $0x14] sm:$0xf] }
 0xa52   :  { %v1924_v29 = vmul.f32 %v1908_v17, %v3620_v58  ;;  %v2436_v17 = vld [vmem:[%s3831_s2 + $0x28] sm:$0xf0] }
 0xa54   :  { %v1931_v30 = vmul.f32 %v1924_v29, %v3637_v44 }
 0xa56   :  { %v1938_v53 = vadd.f32 %v1931_v30, %v3643_v6 }
 0xa58   :  { %v1955_v54 = vsel %vm121_vm0, %v1938_v53, 0.0 }
 0xa59   :  { %1956 = vadd.xlane.f32.xlu0 %v1955_v54 }
 0xa8e   :  { %v1834_v18 = vpop.xlane.xlu0 %1833 }
 0xa8f   :  { %v1841_v41 = vmul.f32 %v1834_v18, %v3352_v36 }
 0xa91   :  { %v1848_v22 = vadd.f32 1e-05, %v1841_v41 }
 0xa93   :  { %2616 = vrsqrt.f32 %v1848_v22  ;;  %vm1915_vm15 = vweird.f32 %v1848_v22 }
 0xa99   :  { %v2617_v37 = vpop.eup %2616 }
 0xa9a   :  { %v1910_v39 = vmul.f32 %v2617_v37, %v1848_v22  ;;  %vm1916_vm14 = vweird.f32 %v2617_v37 }
 0xa9b   :  { %vm1917_vm1 = vmor %vm1915_vm15, %vm1916_vm14 }
 0xa9c   :  { %v1911_v60 = vmul.f32 %v2617_v37, %v1910_v39 }
 0xa9e   :  { %v1912_v24 = vmul.f32 0.5, %v1911_v60 }
 0xaa0   :  { %v1913_v32 = vsub.f32 1.5, %v1912_v24 }
 0xaa2   :  { %v1914_v8 = vmul.f32 %v2617_v37, %v1913_v32 }
 0xaa4   :  { %v1942_v58 = vpop.xlane.xlu1 %1941  ;;  %v1918_v14 = vsel %vm1917_vm1, %v2617_v37, %v1914_v8 }
 0xaa5   :  { %v1961_v28 = vmul.f32 %v1942_v58, %v3352_v36  ;;  %v1925_v52 = vmul.f32 %v1918_v14, %v3627_v50 }
 0xaa7   :  { %v3687_v59 = vsub.f32 %v3648_v2, %v1961_v28  ;;  %v1932_v19 = vmul.f32 %v1925_v52, %v3637_v44 }
 0xaa9   :  { %v1939_v15 = vadd.f32 %v1932_v19, %v3643_v6  ;;  %v1975_v31 = vmul.f32 %v3687_v59, %v3687_v59 }
 0xaab   :  { %v1958_v43 = vsel %vm121_vm0, %v1939_v15, 0.0  ;;  %v1982_v12 = vsel %vm121_vm0, %v1975_v31, 0.0 }
 0xaac   :  { %v1945_v46 = vpop.xlane.xlu2 %1944  ;;  %1959 = vadd.xlane.f32.xlu0 %v1958_v43  ;;  %1983 = vadd.xlane.f32.xlu1 %v1982_v12 }
 0xaad   :  { %v1962_v61 = vmul.f32 %v1945_v46, %v3352_v36 }
 0xaaf   :  { %v3697_v50 = vsub.f32 %v3656_v38, %v1962_v61 }
 0xab1   :  { %v1976_v44 = vmul.f32 %v3697_v50, %v3697_v50 }
 0xab3   :  { %v1985_v6 = vsel %vm121_vm0, %v1976_v44, 0.0 }
 0xab4   :  { %v1948_v2 = vpop.xlane.xlu0 %1947  ;;  %1986 = vadd.xlane.f32.xlu2 %v1985_v6 }
 0xab5   :  { %v1963_v0 = vmul.f32 %v1948_v2, %v3352_v36 }
 0xab7   :  { %v3704_v51 = vsub.f32 %v3664_v56, %v1963_v0 }
 0xab9   :  { %v1977_v1 = vmul.f32 %v3704_v51, %v3704_v51 }
 0xabb   :  { %v1988_v3 = vsel %vm121_vm0, %v1977_v1, 0.0  ;;  %v3766_v1 = vld [vmem:[%s3833_s4 + $0x11] ss:$0 sm:$0xff] }
 0xabc   :  { %1989 = vadd.xlane.f32.xlu1 %v1988_v3  ;;  %v1951_v38 = vpop.xlane.xlu1 %1950 }
 0xabd   :  { %v1964_v55 = vmul.f32 %v1951_v38, %v3352_v36 }
 0xabf   :  { %v3711_v10 = vsub.f32 %v3671_v45, %v1964_v55  ;;  %v2439_v45 = vld [vmem:[%s3831_s2 + $0xb8] sm:$0xf0] }
 0xac0   :  { %v2411_v4 = vor.u32 %v2439_v45, %v2410_v35 }
 0xac1   :  { %v1978_v20 = vmul.f32 %v3711_v10, %v3711_v10 }
 0xac2   :  { %2152 = vmatpush.bf16.msra.mxu3 %v2411_v4 }
 0xac3   :  { %v1991_v47 = vsel %vm121_vm0, %v1978_v20, 0.0 }
 0xac4   :  { %v1954_v42 = vpop.xlane.xlu2 %1953  ;;  %1992 = vadd.xlane.f32.xlu2 %v1991_v47 }
 0xac5   :  { %v1965_v56 = vmul.f32 %v1954_v42, %v3352_v36 }
 0xac6   :  { %2153 = vmatpush.bf16.msra.mxu3 %v2407_v63 }
 0xac7   :  { %v3717_v21 = vsub.f32 %v1937_v33, %v1965_v56 }
 0xac9   :  { %v1979_v40 = vmul.f32 %v3717_v21, %v3717_v21 }
 0xaca   :  { %2154 = vmatpush.bf16.msra.mxu3 %v2403_v23 }
 0xacb   :  { %v1994_v5 = vsel %vm121_vm0, %v1979_v40, 0.0 }
 0xacc   :  { %v1957_v48 = vpop.xlane.xlu0 %1956  ;;  %1995 = vadd.xlane.f32.xlu0 %v1994_v5 }
 0xacd   :  { %v1966_v9 = vmul.f32 %v1957_v48, %v3352_v36 }
 0xacf   :  { %v3723_v16 = vsub.f32 %v1938_v53, %v1966_v9  ;;  %v2399_v53 = vor.u32 %v2436_v17, %v2398_v26 }
 0xad1   :  { %v1980_v13 = vmul.f32 %v3723_v16, %v3723_v16  ;;  %2155 = vmatpush.bf16.msra.mxu3 %v2399_v53 }
 0xad3   :  { %v1997_v62 = vsel %vm121_vm0, %v1980_v13, 0.0 }
 0xad4   :  { %1998 = vadd.xlane.f32.xlu1 %v1997_v62 }
 0xb1f   :  { %v1960_v49 = vpop.xlane.xlu0 %1959  ;;  %v1984_v57 = vpop.xlane.xlu1 %1983 }
 0xb20   :  { %v1967_v33 = vmul.f32 %v1960_v49, %v3352_v36  ;;  %v2003_v11 = vmul.f32 %v1984_v57, %v3352_v36 }
 0xb22   :  { %v3754_v29 = vsub.f32 %v1939_v15, %v1967_v33  ;;  %v2010_v30 = vadd.f32 1e-05, %v2003_v11 }
 0xb24   :  { %2618 = vrsqrt.f32 %v2010_v30  ;;  %v1981_v54 = vmul.f32 %v3754_v29, %v3754_v29  ;;  %vm2023_vm3 = vweird.f32 %v2010_v30 }
 0xb26   :  { %v2000_v18 = vsel %vm121_vm0, %v1981_v54, 0.0 }
 0xb27   :  { %v1987_v41 = vpop.xlane.xlu2 %1986  ;;  %2001 = vadd.xlane.f32.xlu2 %v2000_v18 }
 0xb28   :  { %v2004_v22 = vmul.f32 %v1987_v41, %v3352_v36 }
 0xb2a   :  { %v2619_v37 = vpop.eup %2618  ;;  %v2011_v39 = vadd.f32 1e-05, %v2004_v22 }
 0xb2b   :  { %v2018_v60 = vmul.f32 %v2619_v37, %v2010_v30  ;;  %vm2024_vm2 = vweird.f32 %v2619_v37 }
 0xb2c   :  { %2620 = vrsqrt.f32 %v2011_v39  ;;  %vm2025_vm4 = vmor %vm2023_vm3, %vm2024_vm2  ;;  %vm2033_vm6 = vweird.f32 %v2011_v39 }
 0xb2d   :  { %v2019_v24 = vmul.f32 %v2619_v37, %v2018_v60 }
 0xb2f   :  { %v2020_v32 = vmul.f32 0.5, %v2019_v24  ;;  %v1990_v8 = vpop.xlane.xlu1 %1989 }
 0xb30   :  { %v2005_v58 = vmul.f32 %v1990_v8, %v3352_v36 }
 0xb31   :  { %v2021_v14 = vsub.f32 1.5, %v2020_v32 }
 0xb32   :  { %v2621_v28 = vpop.eup %2620  ;;  %v2012_v52 = vadd.f32 1e-05, %v2005_v58 }
 0xb33   :  { %v2022_v19 = vmul.f32 %v2619_v37, %v2021_v14  ;;  %v2028_v15 = vmul.f32 %v2621_v28, %v2011_v39  ;;  %vm2034_vm5 = vweird.f32 %v2621_v28 }
 0xb34   :  { %2622 = vrsqrt.f32 %v2012_v52  ;;  %vm2035_vm7 = vmor %vm2033_vm6, %vm2034_vm5  ;;  %vm2043_vm9 = vweird.f32 %v2012_v52 }
 0xb35   :  { %v2029_v31 = vmul.f32 %v2621_v28, %v2028_v15  ;;  %v2026_v43 = vsel %vm2025_vm4, %v2619_v37, %v2022_v19 }
 0xb36   :  { %v2087_v2 = vmul.f32 %v2026_v43, %v3687_v59  ;;  %v3773_v59 = vld [vmem:[%s3833_s4 + $0x12] ss:$0 sm:$0xff] }
 0xb37   :  { %v2030_v12 = vmul.f32 0.5, %v2029_v31  ;;  %v1993_v46 = vpop.xlane.xlu2 %1992 }
 0xb38   :  { %v2006_v61 = vmul.f32 %v1993_v46, %v3352_v36  ;;  %v2094_v47 = vmul.f32 %v2087_v2, %v3766_v1 }
 0xb39   :  { %v2031_v44 = vsub.f32 1.5, %v2030_v12 }
 0xb3a   :  { %v2623_v6 = vpop.eup %2622  ;;  %v2013_v0 = vadd.f32 1e-05, %v2006_v61  ;;  %v2101_v62 = vadd.f32 %v2094_v47, %v3773_v59 }
 0xb3b   :  { %v2032_v3 = vmul.f32 %v2621_v28, %v2031_v44  ;;  %v2038_v38 = vmul.f32 %v2623_v6, %v2012_v52  ;;  %vm2044_vm8 = vweird.f32 %v2623_v6 }
 0xb3c   :  { %2624 = vrsqrt.f32 %v2013_v0  ;;  %vm2045_vm10 = vmor %vm2043_vm9, %vm2044_vm8  ;;  %vm2053_vm12 = vweird.f32 %v2013_v0 }
 0xb3d   :  { %v2036_v55 = vsel %vm2035_vm7, %v2621_v28, %v2032_v3  ;;  %v2039_v20 = vmul.f32 %v2623_v6, %v2038_v38 }
 0xb3e   :  { %v2088_v42 = vmul.f32 %v2036_v55, %v3697_v50 }
 0xb3f   :  { %v2040_v56 = vmul.f32 0.5, %v2039_v20  ;;  %v1996_v40 = vpop.xlane.xlu0 %1995 }
 0xb40   :  { %v2095_v5 = vmul.f32 %v2088_v42, %v3766_v1  ;;  %v2007_v48 = vmul.f32 %v1996_v40, %v3352_v36 }
 0xb41   :  { %v2041_v9 = vsub.f32 1.5, %v2040_v56 }
 0xb42   :  { %v2625_v13 = vpop.eup %2624  ;;  %v2102_v35 = vadd.f32 %v2095_v5, %v3773_v59  ;;  %v2014_v45 = vadd.f32 1e-05, %v2007_v48 }
 0xb43   :  { %v2042_v4 = vmul.f32 %v2623_v6, %v2041_v9  ;;  %v2048_v50 = vmul.f32 %v2625_v13, %v2013_v0  ;;  %vm2054_vm11 = vweird.f32 %v2625_v13 }
 0xb44   :  { %v2108_v25 = vpack.c.bf16 %v2102_v35, %v2101_v62  ;;  %2626 = vrsqrt.f32 %v2014_v45  ;;  %vm2055_vm13 = vmor %vm2053_vm12, %vm2054_vm11  ;;  %vm2063_vm15 = vweird.f32 %v2014_v45 }
 0xb45   :  { %v2049_v7 = vmul.f32 %v2625_v13, %v2048_v50  ;;  %v2046_v63 = vsel %vm2045_vm10, %v2623_v6, %v2042_v4 }
 0xb46   :  { %2412 = vmatmul.msk.bf16.vlgmr.msra.gmra.mxu3 %vm121_vm0, %v2108_v25  ;;  %v2089_v33 = vmul.f32 %v2046_v63, %v3704_v51 }
 0xb47   :  { %v2050_v34 = vmul.f32 0.5, %v2049_v7  ;;  %v1999_v27 = vpop.xlane.xlu1 %1998 }
 0xb48   :  { %v2008_v23 = vmul.f32 %v1999_v27, %v3352_v36  ;;  %v2096_v18 = vmul.f32 %v2089_v33, %v3766_v1 }
 0xb49   :  { %v2051_v49 = vsub.f32 1.5, %v2050_v34 }
 0xb4a   :  { %v2627_v57 = vpop.eup %2626  ;;  %v2015_v11 = vadd.f32 1e-05, %v2008_v23  ;;  %v2103_v60 = vadd.f32 %v2096_v18, %v3773_v59 }
 0xb4b   :  { %v2052_v26 = vmul.f32 %v2625_v13, %v2051_v49  ;;  %v2058_v17 = vmul.f32 %v2627_v57, %v2014_v45  ;;  %vm2064_vm14 = vweird.f32 %v2627_v57 }
 0xb4c   :  { %2628 = vrsqrt.f32 %v2015_v11  ;;  %vm2065_vm1 = vmor %vm2063_vm15, %vm2064_vm14  ;;  %vm2073_vm3 = vweird.f32 %v2015_v11 }
 0xb4d   :  { %v2056_v30 = vsel %vm2055_vm13, %v2625_v13, %v2052_v26  ;;  %v2059_v53 = vmul.f32 %v2627_v57, %v2058_v17 }
 0xb4e   :  { %v2090_v54 = vmul.f32 %v2056_v30, %v3711_v10 }
 0xb4f   :  { %v2060_v41 = vmul.f32 0.5, %v2059_v53 }
 0xb50   :  { %v2097_v22 = vmul.f32 %v2090_v54, %v3766_v1 }
 0xb51   :  { %v2061_v37 = vsub.f32 1.5, %v2060_v41 }
 0xb52   :  { %v2629_v39 = vpop.eup %2628  ;;  %v2104_v51 = vadd.f32 %v2097_v22, %v3773_v59 }
 0xb53   :  { %v2062_v24 = vmul.f32 %v2627_v57, %v2061_v37  ;;  %v2068_v32 = vmul.f32 %v2629_v39, %v2015_v11  ;;  %vm2074_vm2 = vweird.f32 %v2629_v39 }
 0xb54   :  { %v2109_v8 = vpack.c.bf16 %v2104_v51, %v2103_v60  ;;  %vm2075_vm4 = vmor %vm2073_vm3, %vm2074_vm2 }
 0xb55   :  { %v2069_v58 = vmul.f32 %v2629_v39, %v2068_v32  ;;  %v2066_v10 = vsel %vm2065_vm1, %v2627_v57, %v2062_v24 }
 0xb56   :  { %2413 = vmatmul.msk.bf16.gmra.mxu3 %vm121_vm0, %v2109_v8  ;;  %v2091_v52 = vmul.f32 %v2066_v10, %v3717_v21 }
 0xb57   :  { %v2070_v14 = vmul.f32 0.5, %v2069_v58 }
 0xb58   :  { %v2098_v43 = vmul.f32 %v2091_v52, %v3766_v1 }
 0xb59   :  { %v2071_v28 = vsub.f32 1.5, %v2070_v14 }
 0xb5a   :  { %v2105_v46 = vadd.f32 %v2098_v43, %v3773_v59 }
 0xb5b   :  { %v2072_v19 = vmul.f32 %v2629_v39, %v2071_v28 }
 0xb5d   :  { %v2076_v15 = vsel %vm2075_vm4, %v2629_v39, %v2072_v19 }
 0xb5e   :  { %v2092_v31 = vmul.f32 %v2076_v15, %v3723_v16 }
 0xb60   :  { %v2099_v12 = vmul.f32 %v2092_v31, %v3766_v1 }
 0xb62   :  { %v2106_v61 = vadd.f32 %v2099_v12, %v3773_v59 }
 0xb64   :  { %v2110_v44 = vpack.c.bf16 %v2106_v61, %v2105_v46 }
 0xb66   :  { %2414 = vmatmul.msk.bf16.gmra.mxu3 %vm121_vm0, %v2110_v44 }
 0xb9a   :  { %v2002_v6 = vpop.xlane.xlu2 %2001 }
 0xb9b   :  { %v2009_v21 = vmul.f32 %v2002_v6, %v3352_v36  ;;  %v33_v36 = vld [vmem:[%s3833_s4 + $0x4] ss:$0 sm:$0xff] }
 0xb9d   :  { %v2016_v2 = vadd.f32 1e-05, %v2009_v21 }
 0xb9f   :  { %2630 = vrsqrt.f32 %v2016_v2  ;;  %vm2083_vm6 = vweird.f32 %v2016_v2 }
 0xba5   :  { %v2631_v0 = vpop.eup %2630 }
 0xba6   :  { %v2078_v3 = vmul.f32 %v2631_v0, %v2016_v2  ;;  %vm2084_vm5 = vweird.f32 %v2631_v0 }
 0xba7   :  { %vm2085_vm7 = vmor %vm2083_vm6, %vm2084_vm5 }
 0xba8   :  { %v2079_v38 = vmul.f32 %v2631_v0, %v2078_v3 }
 0xbaa   :  { %v2080_v16 = vmul.f32 0.5, %v2079_v38 }
 0xbac   :  { %v2081_v55 = vsub.f32 1.5, %v2080_v16 }
 0xbae   :  { %v2082_v20 = vmul.f32 %v2631_v0, %v2081_v55 }
 0xbb0   :  { %v2086_v47 = vsel %vm2085_vm7, %v2631_v0, %v2082_v20 }
 0xbb1   :  { %v2093_v42 = vmul.f32 %v2086_v47, %v3754_v29 }
 0xbb3   :  { %v2100_v56 = vmul.f32 %v2093_v42, %v3766_v1 }
 0xbb5   :  { %v2107_v40 = vadd.f32 %v2100_v56, %v3773_v59 }
 0xbb7   :  { %v2111_v5 = vpack.c.bf16 %v2107_v40, %v2107_v40 }
 0xbb9   :  { %2415 = vmatmul.msk.bf16.gmra.mxu3 %vm121_vm0, %v2111_v5 }
 0xbc9   :  { %v2157_v48 = vpop.f32.mrf.mxu3 }
 0xbca   :  { %v2158_v9 = vadd.f32 %v2157_v48, %v33_v36 }
 0xbcc   :  { %2176 = vst.msk [vmem:[%s3836_s5] sm:$0xff] %vm121_vm0, %v2158_v9 }
 0xbd1   :  { %v2159_v13 = vpop.f32.mrf.mxu3 }
 0xbd2   :  { %v2160_v29 = vadd.f32 %v2159_v13, %v33_v36 }
 0xbd4   :  { %2177 = vst.msk [vmem:[%s3836_s5 + $0x8] sm:$0xff] %vm121_vm0, %v2160_v29 }
 0xbd9   :  { %v2162_v1 = vpop.f32.mrf.mxu3 }
 0xbda   :  { %v2163_v59 = vadd.f32 %v2162_v1, %v33_v36 }
 0xbdc   :  { %2178 = vst.msk [vmem:[%s3836_s5 + $0x10] sm:$0xff] %vm121_vm0, %v2163_v59 }
 0xbe1   :  { %v2164_v62 = vpop.f32.mrf.mxu3 }
 0xbe2   :  { %v2165_v35 = vadd.f32 %v2164_v62, %v33_v36 }
 0xbe4   :  { %2179 = vst.msk [vmem:[%s3836_s5 + $0x18] sm:$0xff] %vm121_vm0, %v2165_v35 }
 0xbe9   :  { %v2167_v45 = vpop.f32.mrf.mxu3 }
 0xbea   :  { %v2168_v4 = vadd.f32 %v2167_v45, %v33_v36 }
 0xbec   :  { %2180 = vst.msk [vmem:[%s3836_s5 + $0x20] sm:$0xff] %vm121_vm0, %v2168_v4 }
 0xbf1   :  { %v2169_v50 = vpop.f32.mrf.mxu3 }
 0xbf2   :  { %v2170_v25 = vadd.f32 %v2169_v50, %v33_v36 }
 0xbf4   :  { %2181 = vst.msk [vmem:[%s3836_s5 + $0x28] sm:$0xff] %vm121_vm0, %v2170_v25 }
 0xc3c   :  { %v2172_v7 = vpop.f32.mrf.mxu3 }
 0xc3d   :  { %v2173_v63 = vadd.f32 %v2172_v7, %v33_v36 }
 0xc3f   :  { %2182 = vst.msk [vmem:[%s3836_s5 + $0x30] sm:$0xff] %vm121_vm0, %v2173_v63 }
 0xc44   :  { %v2174_v34 = vpop.f32.mrf.mxu3 }

</bundles_post_ra>
